<compile_context>
chip_gen: v6e
topology: v6e:2x2x1
jax: 0.10.0
libtpu: 0.0.40
codegen_flags: <defaults>
</compile_context>

<pallas_src>
import numpy as np
import jax
import jax.numpy as jnp
from jax.experimental import pallas as pl
from jax.experimental.pallas import tpu as pltpu

PAD = 0  # Constants.PAD

# ---------------- model hyper-parameters (small, consistent with the module) --
N_SRC_VOCAB = 20
LEN_MAX_SEQ = 16
D_MODEL     = 32          # d_word_vec == d_model
N_LAYERS    = 2
N_HEAD      = 2
D_K         = 16
D_V         = 16
D_INNER     = 64
BATCH       = 2
SEQ_LEN     = 8
LN_EPS      = 1e-5
# NOTE: -1e9 with max-subtraction is safe because no row is ever fully masked
# (every query row has at least one valid same-batch key).  A fully-padded
# sequence would give a uniform softmax row, later zeroed by the non-pad mask.
NEG_INF     = -1e9

# rows of the packed per-layer vector slab (N_LAYERS, 8, 128)
(VROW_BQKV, VROW_BO, VROW_G1, VROW_BE1,
 VROW_FB1, VROW_FB2, VROW_G2, VROW_BE2) = range(8)
VEC_ROWS  = 8
VEC_LANES = 128


# ------------------------------- Pallas kernel -------------------------------
def encoder_fused_kernel(x_ref, bias_ref, npm_ref,
                         wqkv_ref, wo_ref, w1_ref, w2_ref, vec_ref,
                         out_ref):
    x    = x_ref[...]                      # (B*S, D)   flattened activations
    bias = bias_ref[...]                   # (B*S, B*S) block-diag + key-pad additive bias
    npm  = npm_ref[...]                    # (B*S, D)   pre-broadcast non-pad mask
    scale = 1.0 / float(np.sqrt(D_K))
    koff = N_HEAD * D_K                    # start of K block inside fused QKV
    voff = 2 * N_HEAD * D_K                # start of V block

    def layernorm(v, g, b):
        mu  = jnp.mean(v, axis=-1, keepdims=True)
        var = jnp.mean((v - mu) ** 2, axis=-1, keepdims=True)
        return (v - mu) * jax.lax.rsqrt(var + LN_EPS) * g + b

    for li in range(N_LAYERS):             # static unroll: both layers in one call
        vec  = vec_ref[li]                                  # (8, 128) packed vectors
        bqkv = vec[VROW_BQKV, :3 * N_HEAD * D_K]
        bo   = vec[VROW_BO,  :D_MODEL]
        g1   = vec[VROW_G1,  :D_MODEL]
        be1  = vec[VROW_BE1, :D_MODEL]
        fb1  = vec[VROW_FB1, :D_INNER]
        fb2  = vec[VROW_FB2, :D_MODEL]
        g2   = vec[VROW_G2,  :D_MODEL]
        be2  = vec[VROW_BE2, :D_MODEL]

        # ---- fused QKV projection: one MXU push for the whole batch ----------
        qkv = jnp.dot(x, wqkv_ref[li],
                      preferred_element_type=jnp.float32) + bqkv   # (B*S, 3*H*Dk)

        # ---- multi-head self attention over all B*S rows at once -------------
        head_outs = []
        for h in range(N_HEAD):            # static unroll, H=2
            qh = qkv[:, h * D_K:(h + 1) * D_K]
            kh = qkv[:, koff + h * D_K:koff + (h + 1) * D_K]
            vh = qkv[:, voff + h * D_V:voff + (h + 1) * D_V]
            # contract over the feature dim of both operands: no explicit K^T
            logits = jax.lax.dot_general(
                qh, kh, dimension_numbers=(((1,), (1,)), ((), ())),
                preferred_element_type=jnp.float32) * scale + bias     # (B*S, B*S)
            logits = logits - jnp.max(logits, axis=-1, keepdims=True)
            p = jnp.exp(logits)
            p = p / jnp.sum(p, axis=-1, keepdims=True)      # exact reciprocal
            head_outs.append(jnp.dot(p, vh,
                                     preferred_element_type=jnp.float32))  # (B*S, Dv)

        # single output projection for all rows / heads
        attn = jnp.dot(jnp.concatenate(head_outs, axis=-1), wo_ref[li],
                       preferred_element_type=jnp.float32) + bo     # (B*S, D)

        # ---- residual + LayerNorm + non-pad mask ------------------------------
        y = layernorm(attn + x, g1, be1) * npm

        # ---- position-wise FFN (Conv1d k=1 == per-token linear) ---------------
        h1 = jnp.maximum(
            jnp.dot(y, w1_ref[li], preferred_element_type=jnp.float32) + fb1, 0.0)
        f = jnp.dot(h1, w2_ref[li], preferred_element_type=jnp.float32) + fb2

        x = layernorm(f + y, g2, be2) * npm

    out_ref[...] = x


# ----------------------- one-time weight fusing / packing ---------------------
def prepare_encoder_weights(params):
    """Fuse and stack per-layer weights ONCE (off the forward path)."""
    L = params["layers"]
    wqkv = jnp.stack([jnp.concatenate([p["wq"], p["wk"], p["wv"]], axis=-1) for p in L])
    wo   = jnp.stack([p["wo"] for p in L])
    w1   = jnp.stack([p["w1"] for p in L])
    w2   = jnp.stack([p["w2"] for p in L])

    slab = jnp.zeros((N_LAYERS, VEC_ROWS, VEC_LANES), jnp.float32)
    for li, p in enumerate(L):
        rows = {
            VROW_BQKV: jnp.concatenate([p["bq"], p["bk"], p["bv"]], axis=-1),
            VROW_BO:  p["bo"],  VROW_G1:  p["g1"],  VROW_BE1: p["be1"],
            VROW_FB1: p["fb1"], VROW_FB2: p["fb2"], VROW_G2:  p["g2"],
            VROW_BE2: p["be2"],
        }
        for r, v in rows.items():
            v = v.reshape(-1)
            slab = slab.at[li, r, :v.shape[0]].set(v)
    return dict(wqkv=wqkv, wo=wo, w1=w1, w2=w2, vecs=slab)


# --------------------------------- forward ------------------------------------
def encoder_forward_pallas(params, fused, src_seq, src_pos, src_seg):
    B, S = src_seq.shape
    BS = B * S

    # per-call glue (cheap XLA ops; depend on token ids)
    seq_flat  = src_seq.reshape(BS)
    batch_ids = jnp.asarray(np.repeat(np.arange(B), S))          # static constant
    same_b    = batch_ids[:, None] == batch_ids[None, :]
    key_valid = (seq_flat != PAD)[None, :]
    # block-diagonal cross-batch mask folded with the key-pad mask: (B*S, B*S)
    attn_bias = jnp.where(same_b & key_valid, 0.0, NEG_INF).astype(jnp.float32)
    # non-pad mask, pre-broadcast to full lane width (no in-kernel broadcasts)
    npm = jnp.broadcast_to((seq_flat != PAD).astype(jnp.float32)[:, None],
                           (BS, D_MODEL))

    # input embedding (data-dependent gathers stay in XLA; their sum feeds the kernel)
    enc = (jnp.take(params["word_emb"], src_seq, axis=0)
           + jnp.take(params["pos_emb"], src_pos, axis=0)
           + jnp.take(params["seg_emb"], src_seg, axis=0)).astype(jnp.float32)
    x2 = enc.reshape(BS, D_MODEL)

    vmem = pl.BlockSpec(memory_space=pltpu.MemorySpace.VMEM)
    out = pl.pallas_call(
        encoder_fused_kernel,
        out_shape=jax.ShapeDtypeStruct((BS, D_MODEL), jnp.float32),
        in_specs=[vmem] * 8,
        out_specs=vmem,
    )(x2, attn_bias, npm,
      fused["wqkv"], fused["wo"], fused["w1"], fused["w2"], fused["vecs"])
    return out.reshape(B, S, D_MODEL)


# ---------------------------- JAX glue / reference ----------------------------
def get_sinusoid_encoding_table(n_position, d_hid, padding_idx=None):
    pos = np.arange(n_position)[:, None].astype(np.float64)
    hid = np.arange(d_hid)[None, :]
    angle = pos / np.power(10000, 2 * (hid // 2) / d_hid)
    table = angle.copy()
    table[:, 0::2] = np.sin(angle[:, 0::2])
    table[:, 1::2] = np.cos(angle[:, 1::2])
    if padding_idx is not None:
        table[padding_idx] = 0.0
    return jnp.asarray(table, jnp.float32)


def init_params(key):
    n_position = LEN_MAX_SEQ + 1
    ks = jax.random.split(key, 3 + N_LAYERS)

    word_emb = jax.random.normal(ks[0], (N_SRC_VOCAB, D_MODEL), jnp.float32) * 0.1
    word_emb = word_emb.at[PAD].set(0.0)                       # padding_idx
    pos_emb  = get_sinusoid_encoding_table(n_position, D_MODEL, padding_idx=0)
    seg_emb  = jax.random.normal(ks[1], (n_position // 2, D_MODEL), jnp.float32) * 0.1
    seg_emb  = seg_emb.at[0].set(0.0)                          # padding_idx

    layers = []
    for li in range(N_LAYERS):
        lk = jax.random.split(ks[3 + li], 8)
        sc_d  = 1.0 / np.sqrt(D_MODEL)
        sc_hv = 1.0 / np.sqrt(N_HEAD * D_V)
        sc_i  = 1.0 / np.sqrt(D_INNER)
        layers.append(dict(
            wq=jax.random.normal(lk[0], (D_MODEL, N_HEAD * D_K)) * sc_d,
            bq=jnp.zeros((1, N_HEAD * D_K), jnp.float32),
            wk=jax.random.normal(lk[1], (D_MODEL, N_HEAD * D_K)) * sc_d,
            bk=jnp.zeros((1, N_HEAD * D_K), jnp.float32),
            wv=jax.random.normal(lk[2], (D_MODEL, N_HEAD * D_V)) * sc_d,
            bv=jnp.zeros((1, N_HEAD * D_V), jnp.float32),
            wo=jax.random.normal(lk[3], (N_HEAD * D_V, D_MODEL)) * sc_hv,
            bo=jnp.zeros((1, D_MODEL), jnp.float32),
            g1=jnp.ones((1, D_MODEL), jnp.float32),
            be1=jnp.zeros((1, D_MODEL), jnp.float32),
            w1=jax.random.normal(lk[4], (D_MODEL, D_INNER)) * sc_d,
            fb1=jnp.zeros((1, D_INNER), jnp.float32),
            w2=jax.random.normal(lk[5], (D_INNER, D_MODEL)) * sc_i,
            fb2=jnp.zeros((1, D_MODEL), jnp.float32),
            g2=jnp.ones((1, D_MODEL), jnp.float32),
            be2=jnp.zeros((1, D_MODEL), jnp.float32),
        ))
    return dict(word_emb=word_emb, pos_emb=pos_emb, seg_emb=seg_emb, layers=layers)


def encoder_forward_ref(params, src_seq, src_pos, src_seg):
    """Pure-JAX reference (same math, no Pallas). HIGHEST precision so the
    reference is exact f32 on TPU as well as in interpret mode."""
    P = jax.lax.Precision.HIGHEST
    pad_k     = (src_seq == PAD)
    attn_bias = jnp.where(pad_k[:, None, :], NEG_INF, 0.0).astype(jnp.float32)
    non_pad   = (src_seq != PAD).astype(jnp.float32)[..., None]
    x = (jnp.take(params["word_emb"], src_seq, axis=0)
         + jnp.take(params["pos_emb"], src_pos, axis=0)
         + jnp.take(params["seg_emb"], src_seg, axis=0)).astype(jnp.float32)

    def layernorm(v, g, b):
        mu = jnp.mean(v, axis=-1, keepdims=True)
        var = jnp.mean((v - mu) ** 2, axis=-1, keepdims=True)
        return (v - mu) * jax.lax.rsqrt(var + LN_EPS) * g + b

    for p in params["layers"]:
        q = jnp.dot(x, p["wq"], precision=P) + p["bq"]
        k = jnp.dot(x, p["wk"], precision=P) + p["bk"]
        v = jnp.dot(x, p["wv"], precision=P) + p["bv"]
        scale = 1.0 / np.sqrt(D_K)
        attn_out = jnp.zeros_like(x)
        for h in range(N_HEAD):
            qh = q[..., h * D_K:(h + 1) * D_K]
            kh = k[..., h * D_K:(h + 1) * D_K]
            vh = v[..., h * D_V:(h + 1) * D_V]
            logits = jnp.einsum("bqd,bkd->bqk", qh, kh, precision=P) * scale + attn_bias
            pr = jax.nn.softmax(logits, axis=-1)
            oh = jnp.einsum("bqk,bkd->bqd", pr, vh, precision=P)
            attn_out = attn_out + jnp.dot(oh, p["wo"][h * D_V:(h + 1) * D_V, :],
                                          precision=P)
        attn_out = attn_out + p["bo"]
        y = layernorm(attn_out + x, p["g1"], p["be1"]) * non_pad
        f = (jnp.dot(jnp.maximum(jnp.dot(y, p["w1"], precision=P) + p["fb1"], 0.0),
                     p["w2"], precision=P) + p["fb2"])
        x = layernorm(f + y, p["g2"], p["be2"]) * non_pad
    return x


# ------------------------------------ main ------------------------------------
if __name__ == "__main__":
    key = jax.random.PRNGKey(0)
    k_param, k_seq, k_seg = jax.random.split(key, 3)

    params = init_params(k_param)
    fused  = prepare_encoder_weights(params)     # once, off the forward path

    # deterministic inputs; include some PAD (=0) tokens to exercise masking
    src_seq = jax.random.randint(k_seq, (BATCH, SEQ_LEN), 1, N_SRC_VOCAB)
    src_seq = src_seq.at[1, 5:].set(PAD)                      # pad tail of batch 1
    positions = jnp.broadcast_to(jnp.arange(1, SEQ_LEN + 1), (BATCH, SEQ_LEN))
    src_pos = jnp.where(src_seq != PAD, positions, 0)
    src_seg = jax.random.randint(k_seg, (BATCH, SEQ_LEN), 1, (LEN_MAX_SEQ + 1) // 2)
    src_seg = jnp.where(src_seq != PAD, src_seg, 0)

    out = encoder_forward_pallas(params, fused, src_seq, src_pos, src_seg)
    out = jax.block_until_ready(out)

    ref = encoder_forward_ref(params, src_seq, src_pos, src_seg)
    assert out.shape == (BATCH, SEQ_LEN, D_MODEL)
    assert not bool(jnp.any(jnp.isnan(out)))
    # exact softmax reciprocal + f32 matmuls -> tight tolerance restored
    np.testing.assert_allclose(np.asarray(out), np.asarray(ref), rtol=1e-4, atol=1e-4)

    print("KERNEL_OK")
</pallas_src>

<mosaic_0001>
module attributes {stable_mosaic.version = 11 : i64} {
  func.func @encoder_fused_kernel(%arg0: memref<16x32xf32, #tpu.memory_space<vmem>>, %arg1: memref<16x16xf32, #tpu.memory_space<vmem>>, %arg2: memref<16x32xf32, #tpu.memory_space<vmem>>, %arg3: memref<2x32x96xf32, #tpu.memory_space<vmem>>, %arg4: memref<2x32x32xf32, #tpu.memory_space<vmem>>, %arg5: memref<2x32x64xf32, #tpu.memory_space<vmem>>, %arg6: memref<2x64x32xf32, #tpu.memory_space<vmem>>, %arg7: memref<2x8x128xf32, #tpu.memory_space<vmem>>, %arg8: memref<16x32xf32, #tpu.memory_space<vmem>>) attributes {dimension_semantics = [], scalar_prefetch = 0 : i64, scratch_operands = 0 : i64, tpu.core_type = #tpu.core_type<tc>} {
    %c0 = arith.constant 0 : index
    %c0_0 = arith.constant 0 : index
    %0 = vector.load %arg0[%c0, %c0_0] : memref<16x32xf32, #tpu.memory_space<vmem>>, vector<16x32xf32>
    %c0_1 = arith.constant 0 : index
    %c0_2 = arith.constant 0 : index
    %1 = vector.load %arg1[%c0_1, %c0_2] : memref<16x16xf32, #tpu.memory_space<vmem>>, vector<16x16xf32>
    %c0_3 = arith.constant 0 : index
    %c0_4 = arith.constant 0 : index
    %2 = vector.load %arg2[%c0_3, %c0_4] : memref<16x32xf32, #tpu.memory_space<vmem>>, vector<16x32xf32>
    %c0_5 = arith.constant 0 : index
    %c0_6 = arith.constant 0 : index
    %c0_7 = arith.constant 0 : index
    %3 = vector.load %arg7[%c0_5, %c0_6, %c0_7] : memref<2x8x128xf32, #tpu.memory_space<vmem>>, vector<1x8x128xf32>
    %4 = vector.shape_cast %3 : vector<1x8x128xf32> to vector<8x128xf32>
    %5 = vector.extract_strided_slice %4 {offsets = [0, 0], sizes = [1, 96], strides = [1, 1]} : vector<8x128xf32> to vector<1x96xf32>
    %6 = vector.shape_cast %5 : vector<1x96xf32> to vector<96xf32>
    %7 = vector.extract_strided_slice %4 {offsets = [1, 0], sizes = [1, 32], strides = [1, 1]} : vector<8x128xf32> to vector<1x32xf32>
    %8 = vector.shape_cast %7 : vector<1x32xf32> to vector<32xf32>
    %9 = vector.extract_strided_slice %4 {offsets = [2, 0], sizes = [1, 32], strides = [1, 1]} : vector<8x128xf32> to vector<1x32xf32>
    %10 = vector.shape_cast %9 : vector<1x32xf32> to vector<32xf32>
    %11 = vector.extract_strided_slice %4 {offsets = [3, 0], sizes = [1, 32], strides = [1, 1]} : vector<8x128xf32> to vector<1x32xf32>
    %12 = vector.shape_cast %11 : vector<1x32xf32> to vector<32xf32>
    %13 = vector.extract_strided_slice %4 {offsets = [4, 0], sizes = [1, 64], strides = [1, 1]} : vector<8x128xf32> to vector<1x64xf32>
    %14 = vector.shape_cast %13 : vector<1x64xf32> to vector<64xf32>
    %15 = vector.extract_strided_slice %4 {offsets = [5, 0], sizes = [1, 32], strides = [1, 1]} : vector<8x128xf32> to vector<1x32xf32>
    %16 = vector.shape_cast %15 : vector<1x32xf32> to vector<32xf32>
    %17 = vector.extract_strided_slice %4 {offsets = [6, 0], sizes = [1, 32], strides = [1, 1]} : vector<8x128xf32> to vector<1x32xf32>
    %18 = vector.shape_cast %17 : vector<1x32xf32> to vector<32xf32>
    %19 = vector.extract_strided_slice %4 {offsets = [7, 0], sizes = [1, 32], strides = [1, 1]} : vector<8x128xf32> to vector<1x32xf32>
    %20 = vector.shape_cast %19 : vector<1x32xf32> to vector<32xf32>
    %c0_8 = arith.constant 0 : index
    %c0_9 = arith.constant 0 : index
    %c0_10 = arith.constant 0 : index
    %21 = vector.load %arg3[%c0_8, %c0_9, %c0_10] : memref<2x32x96xf32, #tpu.memory_space<vmem>>, vector<1x32x96xf32>
    %22 = vector.shape_cast %21 : vector<1x32x96xf32> to vector<32x96xf32>
    %cst = arith.constant dense<0.000000e+00> : vector<16x96xf32>
    %23 = tpu.matmul %0, %22, %cst {dimension_numbers = #tpu.dot_dimension_numbers<[1], [0], [0], [1], [0, 0, 1, 1], [], []>} : vector<16x32xf32>, vector<32x96xf32>, vector<16x96xf32> -> vector<16x96xf32>
    %24 = vector.shape_cast %6 : vector<96xf32> to vector<1x96xf32>
    %25 = vector.broadcast %24 : vector<1x96xf32> to vector<16x96xf32>
    %26 = arith.addf %23, %25 : vector<16x96xf32>
    %27 = vector.extract_strided_slice %26 {offsets = [0, 0], sizes = [16, 16], strides = [1, 1]} : vector<16x96xf32> to vector<16x16xf32>
    %28 = vector.extract_strided_slice %26 {offsets = [0, 32], sizes = [16, 16], strides = [1, 1]} : vector<16x96xf32> to vector<16x16xf32>
    %29 = vector.extract_strided_slice %26 {offsets = [0, 64], sizes = [16, 16], strides = [1, 1]} : vector<16x96xf32> to vector<16x16xf32>
    %cst_11 = arith.constant dense<0.000000e+00> : vector<16x16xf32>
    %30 = tpu.matmul %27, %28, %cst_11 {dimension_numbers = #tpu.dot_dimension_numbers<[1], [1], [0], [0], [0, 0, 1, 0], [], []>} : vector<16x16xf32>, vector<16x16xf32>, vector<16x16xf32> -> vector<16x16xf32>
    %cst_12 = arith.constant 2.500000e-01 : f32
    %31 = vector.broadcast %cst_12 : f32 to vector<16x16xf32>
    %32 = arith.mulf %30, %31 : vector<16x16xf32>
    %33 = arith.addf %32, %1 : vector<16x16xf32>
    %cst_13 = arith.constant dense<0xFF800000> : vector<16xf32>
    %34 = vector.multi_reduction <maximumf>, %33, %cst_13 [1] : vector<16x16xf32> to vector<16xf32>
    %35 = vector.shape_cast %34 : vector<16xf32> to vector<16x1xf32>
    %36 = vector.broadcast %35 : vector<16x1xf32> to vector<16x16xf32>
    %37 = arith.subf %33, %36 : vector<16x16xf32>
    %38 = math.exp %37 : vector<16x16xf32>
    %cst_14 = arith.constant dense<0.000000e+00> : vector<16xf32>
    %39 = vector.multi_reduction <add>, %38, %cst_14 [1] : vector<16x16xf32> to vector<16xf32>
    %40 = vector.shape_cast %39 : vector<16xf32> to vector<16x1xf32>
    %41 = vector.broadcast %40 : vector<16x1xf32> to vector<16x16xf32>
    %42 = arith.divf %38, %41 : vector<16x16xf32>
    %cst_15 = arith.constant dense<0.000000e+00> : vector<16x16xf32>
    %43 = tpu.matmul %42, %29, %cst_15 {dimension_numbers = #tpu.dot_dimension_numbers<[1], [0], [0], [1], [0, 0, 1, 1], [], []>} : vector<16x16xf32>, vector<16x16xf32>, vector<16x16xf32> -> vector<16x16xf32>
    %44 = vector.extract_strided_slice %26 {offsets = [0, 16], sizes = [16, 16], strides = [1, 1]} : vector<16x96xf32> to vector<16x16xf32>
    %45 = vector.extract_strided_slice %26 {offsets = [0, 48], sizes = [16, 16], strides = [1, 1]} : vector<16x96xf32> to vector<16x16xf32>
    %46 = vector.extract_strided_slice %26 {offsets = [0, 80], sizes = [16, 16], strides = [1, 1]} : vector<16x96xf32> to vector<16x16xf32>
    %cst_16 = arith.constant dense<0.000000e+00> : vector<16x16xf32>
    %47 = tpu.matmul %44, %45, %cst_16 {dimension_numbers = #tpu.dot_dimension_numbers<[1], [1], [0], [0], [0, 0, 1, 0], [], []>} : vector<16x16xf32>, vector<16x16xf32>, vector<16x16xf32> -> vector<16x16xf32>
    %cst_17 = arith.constant 2.500000e-01 : f32
    %48 = vector.broadcast %cst_17 : f32 to vector<16x16xf32>
    %49 = arith.mulf %47, %48 : vector<16x16xf32>
    %50 = arith.addf %49, %1 : vector<16x16xf32>
    %cst_18 = arith.constant dense<0xFF800000> : vector<16xf32>
    %51 = vector.multi_reduction <maximumf>, %50, %cst_18 [1] : vector<16x16xf32> to vector<16xf32>
    %52 = vector.shape_cast %51 : vector<16xf32> to vector<16x1xf32>
    %53 = vector.broadcast %52 : vector<16x1xf32> to vector<16x16xf32>
    %54 = arith.subf %50, %53 : vector<16x16xf32>
    %55 = math.exp %54 : vector<16x16xf32>
    %cst_19 = arith.constant dense<0.000000e+00> : vector<16xf32>
    %56 = vector.multi_reduction <add>, %55, %cst_19 [1] : vector<16x16xf32> to vector<16xf32>
    %57 = vector.shape_cast %56 : vector<16xf32> to vector<16x1xf32>
    %58 = vector.broadcast %57 : vector<16x1xf32> to vector<16x16xf32>
    %59 = arith.divf %55, %58 : vector<16x16xf32>
    %cst_20 = arith.constant dense<0.000000e+00> : vector<16x16xf32>
    %60 = tpu.matmul %59, %46, %cst_20 {dimension_numbers = #tpu.dot_dimension_numbers<[1], [0], [0], [1], [0, 0, 1, 1], [], []>} : vector<16x16xf32>, vector<16x16xf32>, vector<16x16xf32> -> vector<16x16xf32>
    %61 = tpu.concatenate %43, %60 in 1 : vector<16x16xf32>, vector<16x16xf32> -> vector<16x32xf32>
    %c0_21 = arith.constant 0 : index
    %c0_22 = arith.constant 0 : index
    %c0_23 = arith.constant 0 : index
    %62 = vector.load %arg4[%c0_21, %c0_22, %c0_23] : memref<2x32x32xf32, #tpu.memory_space<vmem>>, vector<1x32x32xf32>
    %63 = vector.shape_cast %62 : vector<1x32x32xf32> to vector<32x32xf32>
    %cst_24 = arith.constant dense<0.000000e+00> : vector<16x32xf32>
    %64 = tpu.matmul %61, %63, %cst_24 {dimension_numbers = #tpu.dot_dimension_numbers<[1], [0], [0], [1], [0, 0, 1, 1], [], []>} : vector<16x32xf32>, vector<32x32xf32>, vector<16x32xf32> -> vector<16x32xf32>
    %65 = vector.shape_cast %8 : vector<32xf32> to vector<1x32xf32>
    %66 = vector.broadcast %65 : vector<1x32xf32> to vector<16x32xf32>
    %67 = arith.addf %64, %66 : vector<16x32xf32>
    %68 = arith.addf %67, %0 : vector<16x32xf32>
    %cst_25 = arith.constant dense<0.000000e+00> : vector<16xf32>
    %69 = vector.multi_reduction <add>, %68, %cst_25 [1] : vector<16x32xf32> to vector<16xf32>
    %70 = vector.shape_cast %69 : vector<16xf32> to vector<16x1xf32>
    %cst_26 = arith.constant 3.200000e+01 : f32
    %71 = vector.broadcast %cst_26 : f32 to vector<16x1xf32>
    %72 = arith.divf %70, %71 : vector<16x1xf32>
    %73 = vector.broadcast %72 : vector<16x1xf32> to vector<16x32xf32>
    %74 = arith.subf %68, %73 : vector<16x32xf32>
    %75 = arith.mulf %74, %74 : vector<16x32xf32>
    %cst_27 = arith.constant dense<0.000000e+00> : vector<16xf32>
    %76 = vector.multi_reduction <add>, %75, %cst_27 [1] : vector<16x32xf32> to vector<16xf32>
    %77 = vector.shape_cast %76 : vector<16xf32> to vector<16x1xf32>
    %cst_28 = arith.constant 3.200000e+01 : f32
    %78 = vector.broadcast %cst_28 : f32 to vector<16x1xf32>
    %79 = arith.divf %77, %78 : vector<16x1xf32>
    %80 = vector.broadcast %72 : vector<16x1xf32> to vector<16x32xf32>
    %81 = arith.subf %68, %80 : vector<16x32xf32>
    %cst_29 = arith.constant 9.99999974E-6 : f32
    %82 = vector.broadcast %cst_29 : f32 to vector<16x1xf32>
    %83 = arith.addf %79, %82 : vector<16x1xf32>
    %84 = math.rsqrt %83 : vector<16x1xf32>
    %85 = vector.broadcast %84 : vector<16x1xf32> to vector<16x32xf32>
    %86 = arith.mulf %81, %85 : vector<16x32xf32>
    %87 = vector.shape_cast %10 : vector<32xf32> to vector<1x32xf32>
    %88 = vector.broadcast %87 : vector<1x32xf32> to vector<16x32xf32>
    %89 = arith.mulf %86, %88 : vector<16x32xf32>
    %90 = vector.shape_cast %12 : vector<32xf32> to vector<1x32xf32>
    %91 = vector.broadcast %90 : vector<1x32xf32> to vector<16x32xf32>
    %92 = arith.addf %89, %91 : vector<16x32xf32>
    %93 = arith.mulf %92, %2 : vector<16x32xf32>
    %c0_30 = arith.constant 0 : index
    %c0_31 = arith.constant 0 : index
    %c0_32 = arith.constant 0 : index
    %94 = vector.load %arg5[%c0_30, %c0_31, %c0_32] : memref<2x32x64xf32, #tpu.memory_space<vmem>>, vector<1x32x64xf32>
    %95 = vector.shape_cast %94 : vector<1x32x64xf32> to vector<32x64xf32>
    %cst_33 = arith.constant dense<0.000000e+00> : vector<16x64xf32>
    %96 = tpu.matmul %93, %95, %cst_33 {dimension_numbers = #tpu.dot_dimension_numbers<[1], [0], [0], [1], [0, 0, 1, 1], [], []>} : vector<16x32xf32>, vector<32x64xf32>, vector<16x64xf32> -> vector<16x64xf32>
    %97 = vector.shape_cast %14 : vector<64xf32> to vector<1x64xf32>
    %98 = vector.broadcast %97 : vector<1x64xf32> to vector<16x64xf32>
    %99 = arith.addf %96, %98 : vector<16x64xf32>
    %cst_34 = arith.constant 0.000000e+00 : f32
    %100 = vector.broadcast %cst_34 : f32 to vector<16x64xf32>
    %101 = arith.maximumf %99, %100 : vector<16x64xf32>
    %c0_35 = arith.constant 0 : index
    %c0_36 = arith.constant 0 : index
    %c0_37 = arith.constant 0 : index
    %102 = vector.load %arg6[%c0_35, %c0_36, %c0_37] : memref<2x64x32xf32, #tpu.memory_space<vmem>>, vector<1x64x32xf32>
    %103 = vector.shape_cast %102 : vector<1x64x32xf32> to vector<64x32xf32>
    %cst_38 = arith.constant dense<0.000000e+00> : vector<16x32xf32>
    %104 = tpu.matmul %101, %103, %cst_38 {dimension_numbers = #tpu.dot_dimension_numbers<[1], [0], [0], [1], [0, 0, 1, 1], [], []>} : vector<16x64xf32>, vector<64x32xf32>, vector<16x32xf32> -> vector<16x32xf32>
    %105 = vector.shape_cast %16 : vector<32xf32> to vector<1x32xf32>
    %106 = vector.broadcast %105 : vector<1x32xf32> to vector<16x32xf32>
    %107 = arith.addf %104, %106 : vector<16x32xf32>
    %108 = arith.addf %107, %93 : vector<16x32xf32>
    %cst_39 = arith.constant dense<0.000000e+00> : vector<16xf32>
    %109 = vector.multi_reduction <add>, %108, %cst_39 [1] : vector<16x32xf32> to vector<16xf32>
    %110 = vector.shape_cast %109 : vector<16xf32> to vector<16x1xf32>
    %cst_40 = arith.constant 3.200000e+01 : f32
    %111 = vector.broadcast %cst_40 : f32 to vector<16x1xf32>
    %112 = arith.divf %110, %111 : vector<16x1xf32>
    %113 = vector.broadcast %112 : vector<16x1xf32> to vector<16x32xf32>
    %114 = arith.subf %108, %113 : vector<16x32xf32>
    %115 = arith.mulf %114, %114 : vector<16x32xf32>
    %cst_41 = arith.constant dense<0.000000e+00> : vector<16xf32>
    %116 = vector.multi_reduction <add>, %115, %cst_41 [1] : vector<16x32xf32> to vector<16xf32>
    %117 = vector.shape_cast %116 : vector<16xf32> to vector<16x1xf32>
    %cst_42 = arith.constant 3.200000e+01 : f32
    %118 = vector.broadcast %cst_42 : f32 to vector<16x1xf32>
    %119 = arith.divf %117, %118 : vector<16x1xf32>
    %120 = vector.broadcast %112 : vector<16x1xf32> to vector<16x32xf32>
    %121 = arith.subf %108, %120 : vector<16x32xf32>
    %cst_43 = arith.constant 9.99999974E-6 : f32
    %122 = vector.broadcast %cst_43 : f32 to vector<16x1xf32>
    %123 = arith.addf %119, %122 : vector<16x1xf32>
    %124 = math.rsqrt %123 : vector<16x1xf32>
    %125 = vector.broadcast %124 : vector<16x1xf32> to vector<16x32xf32>
    %126 = arith.mulf %121, %125 : vector<16x32xf32>
    %127 = vector.shape_cast %18 : vector<32xf32> to vector<1x32xf32>
    %128 = vector.broadcast %127 : vector<1x32xf32> to vector<16x32xf32>
    %129 = arith.mulf %126, %128 : vector<16x32xf32>
    %130 = vector.shape_cast %20 : vector<32xf32> to vector<1x32xf32>
    %131 = vector.broadcast %130 : vector<1x32xf32> to vector<16x32xf32>
    %132 = arith.addf %129, %131 : vector<16x32xf32>
    %133 = arith.mulf %132, %2 : vector<16x32xf32>
    %c1 = arith.constant 1 : index
    %c0_44 = arith.constant 0 : index
    %c0_45 = arith.constant 0 : index
    %134 = vector.load %arg7[%c1, %c0_44, %c0_45] : memref<2x8x128xf32, #tpu.memory_space<vmem>>, vector<1x8x128xf32>
    %135 = vector.shape_cast %134 : vector<1x8x128xf32> to vector<8x128xf32>
    %136 = vector.extract_strided_slice %135 {offsets = [0, 0], sizes = [1, 96], strides = [1, 1]} : vector<8x128xf32> to vector<1x96xf32>
    %137 = vector.shape_cast %136 : vector<1x96xf32> to vector<96xf32>
    %138 = vector.extract_strided_slice %135 {offsets = [1, 0], sizes = [1, 32], strides = [1, 1]} : vector<8x128xf32> to vector<1x32xf32>
    %139 = vector.shape_cast %138 : vector<1x32xf32> to vector<32xf32>
    %140 = vector.extract_strided_slice %135 {offsets = [2, 0], sizes = [1, 32], strides = [1, 1]} : vector<8x128xf32> to vector<1x32xf32>
    %141 = vector.shape_cast %140 : vector<1x32xf32> to vector<32xf32>
    %142 = vector.extract_strided_slice %135 {offsets = [3, 0], sizes = [1, 32], strides = [1, 1]} : vector<8x128xf32> to vector<1x32xf32>
    %143 = vector.shape_cast %142 : vector<1x32xf32> to vector<32xf32>
    %144 = vector.extract_strided_slice %135 {offsets = [4, 0], sizes = [1, 64], strides = [1, 1]} : vector<8x128xf32> to vector<1x64xf32>
    %145 = vector.shape_cast %144 : vector<1x64xf32> to vector<64xf32>
    %146 = vector.extract_strided_slice %135 {offsets = [5, 0], sizes = [1, 32], strides = [1, 1]} : vector<8x128xf32> to vector<1x32xf32>
    %147 = vector.shape_cast %146 : vector<1x32xf32> to vector<32xf32>
    %148 = vector.extract_strided_slice %135 {offsets = [6, 0], sizes = [1, 32], strides = [1, 1]} : vector<8x128xf32> to vector<1x32xf32>
    %149 = vector.shape_cast %148 : vector<1x32xf32> to vector<32xf32>
    %150 = vector.extract_strided_slice %135 {offsets = [7, 0], sizes = [1, 32], strides = [1, 1]} : vector<8x128xf32> to vector<1x32xf32>
    %151 = vector.shape_cast %150 : vector<1x32xf32> to vector<32xf32>
    %c1_46 = arith.constant 1 : index
    %c0_47 = arith.constant 0 : index
    %c0_48 = arith.constant 0 : index
    %152 = vector.load %arg3[%c1_46, %c0_47, %c0_48] : memref<2x32x96xf32, #tpu.memory_space<vmem>>, vector<1x32x96xf32>
    %153 = vector.shape_cast %152 : vector<1x32x96xf32> to vector<32x96xf32>
    %cst_49 = arith.constant dense<0.000000e+00> : vector<16x96xf32>
    %154 = tpu.matmul %133, %153, %cst_49 {dimension_numbers = #tpu.dot_dimension_numbers<[1], [0], [0], [1], [0, 0, 1, 1], [], []>} : vector<16x32xf32>, vector<32x96xf32>, vector<16x96xf32> -> vector<16x96xf32>
    %155 = vector.shape_cast %137 : vector<96xf32> to vector<1x96xf32>
    %156 = vector.broadcast %155 : vector<1x96xf32> to vector<16x96xf32>
    %157 = arith.addf %154, %156 : vector<16x96xf32>
    %158 = vector.extract_strided_slice %157 {offsets = [0, 0], sizes = [16, 16], strides = [1, 1]} : vector<16x96xf32> to vector<16x16xf32>
    %159 = vector.extract_strided_slice %157 {offsets = [0, 32], sizes = [16, 16], strides = [1, 1]} : vector<16x96xf32> to vector<16x16xf32>
    %160 = vector.extract_strided_slice %157 {offsets = [0, 64], sizes = [16, 16], strides = [1, 1]} : vector<16x96xf32> to vector<16x16xf32>
    %cst_50 = arith.constant dense<0.000000e+00> : vector<16x16xf32>
    %161 = tpu.matmul %158, %159, %cst_50 {dimension_numbers = #tpu.dot_dimension_numbers<[1], [1], [0], [0], [0, 0, 1, 0], [], []>} : vector<16x16xf32>, vector<16x16xf32>, vector<16x16xf32> -> vector<16x16xf32>
    %cst_51 = arith.constant 2.500000e-01 : f32
    %162 = vector.broadcast %cst_51 : f32 to vector<16x16xf32>
    %163 = arith.mulf %161, %162 : vector<16x16xf32>
    %164 = arith.addf %163, %1 : vector<16x16xf32>
    %cst_52 = arith.constant dense<0xFF800000> : vector<16xf32>
    %165 = vector.multi_reduction <maximumf>, %164, %cst_52 [1] : vector<16x16xf32> to vector<16xf32>
    %166 = vector.shape_cast %165 : vector<16xf32> to vector<16x1xf32>
    %167 = vector.broadcast %166 : vector<16x1xf32> to vector<16x16xf32>
    %168 = arith.subf %164, %167 : vector<16x16xf32>
    %169 = math.exp %168 : vector<16x16xf32>
    %cst_53 = arith.constant dense<0.000000e+00> : vector<16xf32>
    %170 = vector.multi_reduction <add>, %169, %cst_53 [1] : vector<16x16xf32> to vector<16xf32>
    %171 = vector.shape_cast %170 : vector<16xf32> to vector<16x1xf32>
    %172 = vector.broadcast %171 : vector<16x1xf32> to vector<16x16xf32>
    %173 = arith.divf %169, %172 : vector<16x16xf32>
    %cst_54 = arith.constant dense<0.000000e+00> : vector<16x16xf32>
    %174 = tpu.matmul %173, %160, %cst_54 {dimension_numbers = #tpu.dot_dimension_numbers<[1], [0], [0], [1], [0, 0, 1, 1], [], []>} : vector<16x16xf32>, vector<16x16xf32>, vector<16x16xf32> -> vector<16x16xf32>
    %175 = vector.extract_strided_slice %157 {offsets = [0, 16], sizes = [16, 16], strides = [1, 1]} : vector<16x96xf32> to vector<16x16xf32>
    %176 = vector.extract_strided_slice %157 {offsets = [0, 48], sizes = [16, 16], strides = [1, 1]} : vector<16x96xf32> to vector<16x16xf32>
    %177 = vector.extract_strided_slice %157 {offsets = [0, 80], sizes = [16, 16], strides = [1, 1]} : vector<16x96xf32> to vector<16x16xf32>
    %cst_55 = arith.constant dense<0.000000e+00> : vector<16x16xf32>
    %178 = tpu.matmul %175, %176, %cst_55 {dimension_numbers = #tpu.dot_dimension_numbers<[1], [1], [0], [0], [0, 0, 1, 0], [], []>} : vector<16x16xf32>, vector<16x16xf32>, vector<16x16xf32> -> vector<16x16xf32>
    %cst_56 = arith.constant 2.500000e-01 : f32
    %179 = vector.broadcast %cst_56 : f32 to vector<16x16xf32>
    %180 = arith.mulf %178, %179 : vector<16x16xf32>
    %181 = arith.addf %180, %1 : vector<16x16xf32>
    %cst_57 = arith.constant dense<0xFF800000> : vector<16xf32>
    %182 = vector.multi_reduction <maximumf>, %181, %cst_57 [1] : vector<16x16xf32> to vector<16xf32>
    %183 = vector.shape_cast %182 : vector<16xf32> to vector<16x1xf32>
    %184 = vector.broadcast %183 : vector<16x1xf32> to vector<16x16xf32>
    %185 = arith.subf %181, %184 : vector<16x16xf32>
    %186 = math.exp %185 : vector<16x16xf32>
    %cst_58 = arith.constant dense<0.000000e+00> : vector<16xf32>
    %187 = vector.multi_reduction <add>, %186, %cst_58 [1] : vector<16x16xf32> to vector<16xf32>
    %188 = vector.shape_cast %187 : vector<16xf32> to vector<16x1xf32>
    %189 = vector.broadcast %188 : vector<16x1xf32> to vector<16x16xf32>
    %190 = arith.divf %186, %189 : vector<16x16xf32>
    %cst_59 = arith.constant dense<0.000000e+00> : vector<16x16xf32>
    %191 = tpu.matmul %190, %177, %cst_59 {dimension_numbers = #tpu.dot_dimension_numbers<[1], [0], [0], [1], [0, 0, 1, 1], [], []>} : vector<16x16xf32>, vector<16x16xf32>, vector<16x16xf32> -> vector<16x16xf32>
    %192 = tpu.concatenate %174, %191 in 1 : vector<16x16xf32>, vector<16x16xf32> -> vector<16x32xf32>
    %c1_60 = arith.constant 1 : index
    %c0_61 = arith.constant 0 : index
    %c0_62 = arith.constant 0 : index
    %193 = vector.load %arg4[%c1_60, %c0_61, %c0_62] : memref<2x32x32xf32, #tpu.memory_space<vmem>>, vector<1x32x32xf32>
    %194 = vector.shape_cast %193 : vector<1x32x32xf32> to vector<32x32xf32>
    %cst_63 = arith.constant dense<0.000000e+00> : vector<16x32xf32>
    %195 = tpu.matmul %192, %194, %cst_63 {dimension_numbers = #tpu.dot_dimension_numbers<[1], [0], [0], [1], [0, 0, 1, 1], [], []>} : vector<16x32xf32>, vector<32x32xf32>, vector<16x32xf32> -> vector<16x32xf32>
    %196 = vector.shape_cast %139 : vector<32xf32> to vector<1x32xf32>
    %197 = vector.broadcast %196 : vector<1x32xf32> to vector<16x32xf32>
    %198 = arith.addf %195, %197 : vector<16x32xf32>
    %199 = arith.addf %198, %133 : vector<16x32xf32>
    %cst_64 = arith.constant dense<0.000000e+00> : vector<16xf32>
    %200 = vector.multi_reduction <add>, %199, %cst_64 [1] : vector<16x32xf32> to vector<16xf32>
    %201 = vector.shape_cast %200 : vector<16xf32> to vector<16x1xf32>
    %cst_65 = arith.constant 3.200000e+01 : f32
    %202 = vector.broadcast %cst_65 : f32 to vector<16x1xf32>
    %203 = arith.divf %201, %202 : vector<16x1xf32>
    %204 = vector.broadcast %203 : vector<16x1xf32> to vector<16x32xf32>
    %205 = arith.subf %199, %204 : vector<16x32xf32>
    %206 = arith.mulf %205, %205 : vector<16x32xf32>
    %cst_66 = arith.constant dense<0.000000e+00> : vector<16xf32>
    %207 = vector.multi_reduction <add>, %206, %cst_66 [1] : vector<16x32xf32> to vector<16xf32>
    %208 = vector.shape_cast %207 : vector<16xf32> to vector<16x1xf32>
    %cst_67 = arith.constant 3.200000e+01 : f32
    %209 = vector.broadcast %cst_67 : f32 to vector<16x1xf32>
    %210 = arith.divf %208, %209 : vector<16x1xf32>
    %211 = vector.broadcast %203 : vector<16x1xf32> to vector<16x32xf32>
    %212 = arith.subf %199, %211 : vector<16x32xf32>
    %cst_68 = arith.constant 9.99999974E-6 : f32
    %213 = vector.broadcast %cst_68 : f32 to vector<16x1xf32>
    %214 = arith.addf %210, %213 : vector<16x1xf32>
    %215 = math.rsqrt %214 : vector<16x1xf32>
    %216 = vector.broadcast %215 : vector<16x1xf32> to vector<16x32xf32>
    %217 = arith.mulf %212, %216 : vector<16x32xf32>
    %218 = vector.shape_cast %141 : vector<32xf32> to vector<1x32xf32>
    %219 = vector.broadcast %218 : vector<1x32xf32> to vector<16x32xf32>
    %220 = arith.mulf %217, %219 : vector<16x32xf32>
    %221 = vector.shape_cast %143 : vector<32xf32> to vector<1x32xf32>
    %222 = vector.broadcast %221 : vector<1x32xf32> to vector<16x32xf32>
    %223 = arith.addf %220, %222 : vector<16x32xf32>
    %224 = arith.mulf %223, %2 : vector<16x32xf32>
    %c1_69 = arith.constant 1 : index
    %c0_70 = arith.constant 0 : index
    %c0_71 = arith.constant 0 : index
    %225 = vector.load %arg5[%c1_69, %c0_70, %c0_71] : memref<2x32x64xf32, #tpu.memory_space<vmem>>, vector<1x32x64xf32>
    %226 = vector.shape_cast %225 : vector<1x32x64xf32> to vector<32x64xf32>
    %cst_72 = arith.constant dense<0.000000e+00> : vector<16x64xf32>
    %227 = tpu.matmul %224, %226, %cst_72 {dimension_numbers = #tpu.dot_dimension_numbers<[1], [0], [0], [1], [0, 0, 1, 1], [], []>} : vector<16x32xf32>, vector<32x64xf32>, vector<16x64xf32> -> vector<16x64xf32>
    %228 = vector.shape_cast %145 : vector<64xf32> to vector<1x64xf32>
    %229 = vector.broadcast %228 : vector<1x64xf32> to vector<16x64xf32>
    %230 = arith.addf %227, %229 : vector<16x64xf32>
    %cst_73 = arith.constant 0.000000e+00 : f32
    %231 = vector.broadcast %cst_73 : f32 to vector<16x64xf32>
    %232 = arith.maximumf %230, %231 : vector<16x64xf32>
    %c1_74 = arith.constant 1 : index
    %c0_75 = arith.constant 0 : index
    %c0_76 = arith.constant 0 : index
    %233 = vector.load %arg6[%c1_74, %c0_75, %c0_76] : memref<2x64x32xf32, #tpu.memory_space<vmem>>, vector<1x64x32xf32>
    %234 = vector.shape_cast %233 : vector<1x64x32xf32> to vector<64x32xf32>
    %cst_77 = arith.constant dense<0.000000e+00> : vector<16x32xf32>
    %235 = tpu.matmul %232, %234, %cst_77 {dimension_numbers = #tpu.dot_dimension_numbers<[1], [0], [0], [1], [0, 0, 1, 1], [], []>} : vector<16x64xf32>, vector<64x32xf32>, vector<16x32xf32> -> vector<16x32xf32>
    %236 = vector.shape_cast %147 : vector<32xf32> to vector<1x32xf32>
    %237 = vector.broadcast %236 : vector<1x32xf32> to vector<16x32xf32>
    %238 = arith.addf %235, %237 : vector<16x32xf32>
    %239 = arith.addf %238, %224 : vector<16x32xf32>
    %cst_78 = arith.constant dense<0.000000e+00> : vector<16xf32>
    %240 = vector.multi_reduction <add>, %239, %cst_78 [1] : vector<16x32xf32> to vector<16xf32>
    %241 = vector.shape_cast %240 : vector<16xf32> to vector<16x1xf32>
    %cst_79 = arith.constant 3.200000e+01 : f32
    %242 = vector.broadcast %cst_79 : f32 to vector<16x1xf32>
    %243 = arith.divf %241, %242 : vector<16x1xf32>
    %244 = vector.broadcast %243 : vector<16x1xf32> to vector<16x32xf32>
    %245 = arith.subf %239, %244 : vector<16x32xf32>
    %246 = arith.mulf %245, %245 : vector<16x32xf32>
    %cst_80 = arith.constant dense<0.000000e+00> : vector<16xf32>
    %247 = vector.multi_reduction <add>, %246, %cst_80 [1] : vector<16x32xf32> to vector<16xf32>
    %248 = vector.shape_cast %247 : vector<16xf32> to vector<16x1xf32>
    %cst_81 = arith.constant 3.200000e+01 : f32
    %249 = vector.broadcast %cst_81 : f32 to vector<16x1xf32>
    %250 = arith.divf %248, %249 : vector<16x1xf32>
    %251 = vector.broadcast %243 : vector<16x1xf32> to vector<16x32xf32>
    %252 = arith.subf %239, %251 : vector<16x32xf32>
    %cst_82 = arith.constant 9.99999974E-6 : f32
    %253 = vector.broadcast %cst_82 : f32 to vector<16x1xf32>
    %254 = arith.addf %250, %253 : vector<16x1xf32>
    %255 = math.rsqrt %254 : vector<16x1xf32>
    %256 = vector.broadcast %255 : vector<16x1xf32> to vector<16x32xf32>
    %257 = arith.mulf %252, %256 : vector<16x32xf32>
    %258 = vector.shape_cast %149 : vector<32xf32> to vector<1x32xf32>
    %259 = vector.broadcast %258 : vector<1x32xf32> to vector<16x32xf32>
    %260 = arith.mulf %257, %259 : vector<16x32xf32>
    %261 = vector.shape_cast %151 : vector<32xf32> to vector<1x32xf32>
    %262 = vector.broadcast %261 : vector<1x32xf32> to vector<16x32xf32>
    %263 = arith.addf %260, %262 : vector<16x32xf32>
    %264 = arith.mulf %263, %2 : vector<16x32xf32>
    %c0_83 = arith.constant 0 : index
    %c0_84 = arith.constant 0 : index
    %265 = vector.load %arg8[%c0_83, %c0_84] : memref<16x32xf32, #tpu.memory_space<vmem>>, vector<16x32xf32>
    tpu.vector_store %arg8[%c0_83, %c0_84], %264 {strides = array<i32>} : memref<16x32xf32, #tpu.memory_space<vmem>>, vector<16x32xf32>,
    return
  }
}

</mosaic_0001>

<bundles_post_ra>
// kernel: tpu_custom_call.1
= control target key start
LH: loop header
LB: loop body
LE: loop exit
PB: predicated region body
PF: predicated region fallthrough
CT: control target
= control target key end

     0   :  { %13 = vsyncpa [#allocation3], 0  ;;  %s2776_s0 = inlined_call_operand.hbm [shape: f32[16,32], index: 0, kind: input, shape index: {}]   ;;  %s2777_s1 = inlined_call_operand.hbm [shape: f32[16,16], index: 1, kind: input, shape index: {}]   ;;  %s2778_s2 = inlined_call_operand.hbm [shape: f32[16,32], index: 2, kind: input, shape index: {}]   ;;  %s2779_s3 = inlined_call_operand.vmem [shape: f32[2,32,96], index: 3, kind: input, shape index: {}]   ;;  %s2780_s4 = inlined_call_operand.vmem [shape: f32[2,32,32], index: 4, kind: input, shape index: {}]   ;;  %s2781_s5 = inlined_call_operand.vmem [shape: f32[2,32,64], index: 5, kind: input, shape index: {}]   ;;  %s2782_s6 = inlined_call_operand.vmem [shape: f32[2,64,32], index: 6, kind: input, shape index: {}]   ;;  %s2783_s7 = inlined_call_operand.hbm [shape: f32[2,8,128], index: 7, kind: input, shape index: {}]   ;;  %s2784_s8 = inlined_call_operand.hbm [shape: f32[16,32], index: 8, kind: output, shape index: {}]  }
   0x1   :  { %14 = vsyncpa [#allocation6], 0 }
   0x2   :  { %15 = vsyncpa [#allocation9], 0 }
   0x3   :  { %16 = vsyncpa [#allocation4], 0  ;;  %s2324_s27 = smov [#allocation5]   ;;  %s2325_s29 = smov [#allocation2]  }
   0x4   :  { %s34_s28 = sshll.u32 %s2324_s27, 4  ;;  %s22_s30 = sshll.u32 %s2325_s29, 4  ;;  %s35_s28 = int_to_ptr.vmem [resolvable:$true] %s34_s28  ;;  %s23_s30 = int_to_ptr.vmem [resolvable:$true] %s22_s30 }
   0x5   :  { %s2224_s9 = scalar_lea.vmem %s35_s28, 256  ;;  %p2229_p1 = scmp.lt.s32.totalorder %s35_s28, %s35_s28 }
   0x6   :  { %p2225_p0 = scmp.ne.s32.totalorder %s35_s28, %s2224_s9  ;;  %p2230_p2 = scmp.lt.s32.totalorder %s2224_s9, %s2224_s9 }
   0x8   :  { %p2231_p3 = por %p2230_p2, %p2229_p1 }
   0xa   :  { %p2232_p4 = pnand %p2231_p3, %p2225_p0 }
   0xc   :  { %2235 = shalt.err (!%p2232_p4)
}
   0xd   :  { %s2326_s10 = smov 128   ;;  %s2327_s11 = smov 8  }
   0xe   :  { %40 = dma.hbm_to_vmem [thread:$0]  %s2777_s1, 256, %s35_s28, [#allocation6], %s2326_s10, %s2326_s10, %s2327_s11  }
   0xf   :  { %s2244_s14 = scalar_lea.vmem %s23_s30, 256  ;;  %p2249_p6 = scmp.lt.s32.totalorder %s23_s30, %s23_s30 }
  0x10   :  { %p2245_p5 = scmp.ne.s32.totalorder %s23_s30, %s2244_s14  ;;  %p2250_p7 = scmp.lt.s32.totalorder %s2244_s14, %s2244_s14 }
  0x12   :  { %p2251_p8 = por %p2250_p7, %p2249_p6 }
  0x14   :  { %p2252_p9 = pnand %p2251_p8, %p2245_p5 }
  0x16   :  { %2255 = shalt.err (!%p2252_p9)
}
  0x17   :  { %28 = dma.hbm_to_vmem [thread:$0]  %s2776_s0, 256, %s23_s30, [#allocation3], %s2326_s10, %s2326_s10, %s2327_s11  }
  0x18   :  { %s2328_s17 = smov [#allocation7]   ;;  %s2329_s19 = smov [#allocation8]  }
  0x19   :  { %s46_s18 = sshll.u32 %s2328_s17, 4  ;;  %s66_s20 = sshll.u32 %s2329_s19, 4  ;;  %s47_s18 = int_to_ptr.vmem [resolvable:$true] %s46_s18  ;;  %s67_s20 = int_to_ptr.vmem [resolvable:$true] %s66_s20 }
  0x1a   :  { %s2264_s1 = scalar_lea.vmem %s47_s18, 256  ;;  %p2269_p11 = scmp.lt.s32.totalorder %s47_s18, %s47_s18 }
  0x1b   :  { %p2265_p10 = scmp.ne.s32.totalorder %s47_s18, %s2264_s1  ;;  %p2270_p12 = scmp.lt.s32.totalorder %s2264_s1, %s2264_s1 }
  0x1d   :  { %p2271_p13 = por %p2270_p12, %p2269_p11 }
  0x1f   :  { %p2272_p0 = pnand %p2271_p13, %p2265_p10 }
  0x21   :  { %2275 = shalt.err (!%p2272_p0)
}
  0x22   :  { %52 = dma.hbm_to_vmem [thread:$0]  %s2778_s2, 256, %s47_s18, [#allocation6], %s2326_s10, %s2326_s10, %s2327_s11  }
  0x23   :  { %s2284_s0 = scalar_lea.vmem %s67_s20, 256  ;;  %p2289_p2 = scmp.lt.s32.totalorder %s67_s20, %s67_s20 }
  0x24   :  { %p2285_p1 = scmp.ne.s32.totalorder %s67_s20, %s2284_s0  ;;  %p2290_p3 = scmp.lt.s32.totalorder %s2284_s0, %s2284_s0 }
  0x26   :  { %p2291_p4 = por %p2290_p3, %p2289_p2 }
  0x28   :  { %p2292_p5 = pnand %p2291_p4, %p2285_p1 }
  0x2a   :  { %2295 = shalt.err (!%p2292_p5)
}
  0x2b   :  { %72 = dma.hbm_to_vmem [thread:$0]  %s2783_s7, 256, %s67_s20, [#allocation9], %s2326_s10, %s2326_s10, %s2327_s11  }
  0x2c   :  { %2316 = dma.done.wait [#allocation3], 256  }
  0x2d   :  { %2317 = vsyncadd [#allocation3], 4294967040 }
  0x2e   :  { %2318 = dma.done.wait [#allocation6], 512  }
  0x2f   :  { %2319 = vsyncadd [#allocation6], 4294966784 }
  0x30   :  { %2320 = dma.done.wait [#allocation9], 256  }
  0x31   :  { %2321 = vsyncadd [#allocation9], 4294967040  ;;  %vm100_vm0 = vcmask 261120   ;;  %v95_v0 = vld [vmem:[%s2779_s3 + $0x18] sm:$0xff]  ;;  %v94_v1 = vld [vmem:[%s2779_s3 + $0x10] sm:$0xff]  ;;  %v96_v6 = vlaneseq  ;;  %vm188_vm1 = vcmask 130048  }
  0x32   :  { %1995 = vmatprep.subr.mxu1 %v95_v0  ;;  %v2412_v2 = vld [vmem:[#allocation2] sm:$0xff]  ;;  %v93_v3 = vld [vmem:[%s2779_s3 + $0x8] sm:$0xff]  ;;  %v2429_v9 = vld [vmem:[#allocation8] sm:$0xff]  ;;  %s2330_s9 = smov 80   ;;  %s2331_s12 = smov 96   ;;  %vm834_vm2 = vcmask 523264  }
  0x33   :  { %1996 = vmatpush3.msra.mxu1 %v95_v0  ;;  %2003 = vmatprep.mubr.msk.f32.mxu1 %vm100_vm0, %v2412_v2  ;;  %v92_v4 = vld [vmem:[%s2779_s3] sm:$0xff]  ;;  %v2422_v5 = vld [vmem:[#allocation2 + $0x8] sm:$0xff]  ;;  %v2426_v7 = vshrl.u32 %v96_v6, 7  ;;  %s2332_s13 = smov 112   ;;  %v2464_v22 = vld [vmem:[#allocation5 + $0x8] sm:$0xff]  ;;  %s2333_s14 = smov 64  }
  0x34   :  { %1997 = vmatprep.subr.mxu1 %v94_v1  ;;  %v2466_v25 = vld [vmem:[#allocation5] sm:$0xff]  ;;  %s2334_s15 = smov 48   ;;  %s2335_s0 = smov 16  }
  0x35   :  { %1998 = vmatpush3.msra.mxu1 %v94_v1  ;;  %v98_v8 = vsub.s32 0, %v2426_v7 }
  0x36   :  { %1999 = vmatprep.subr.mxu1 %v93_v3 }
  0x37   :  { %2000 = vmatpush3.msra.mxu1 %v93_v3  ;;  %v99_v10 = vrot.slane %v2429_v9, %v98_v8 }
  0x38   :  { %2001 = vmatprep.subr.mxu1 %v92_v4 }
  0x39   :  { %2002 = vmatpush3.msra.mxu1 %v92_v4 }
  0x3a   :  { %2004 = vmatmul.mubr.msk.f32.vlgmr.msra.gmra.mxu1 %vm100_vm0, %v2422_v5 }
  0xfa   :  { %v2005_v11 = vpop.f32.mrf.mxu1 }
  0xfb   :  { %v2434_v12 = vadd.f32 %v2005_v11, %v99_v10 }
  0xfc   :  { %v173_v13 = vpop.f32.mrf.mxu1 }
  0xfd   :  { %v2436_v14 = vadd.f32 %v173_v13, %v99_v10  ;;  %391 = vrot.lane.b32.xlu1 %v2434_v12, %s2330_s9  ;;  %186 = vrot.lane.b32.xlu0 %v2434_v12, %s2331_s12 }
  0xff   :  { %2010 = vmatprep.mubr.msk.f32.mxu1 %vm188_vm1, %v2436_v14 }
 0x101   :  { %389 = vrot.lane.b32.xlu1 %v2436_v14, %s2330_s9  ;;  %184 = vrot.lane.b32.xlu0 %v2436_v14, %s2331_s12 }
 0x105   :  { %387 = vrot.lane.b32.xlu1 %v2434_v12, %s2332_s13  ;;  %385 = vrot.lane.b32.xlu0 %v2436_v14, %s2332_s13 }
 0x16f   :  { %v187_v15 = vpop.permute.xlu0 %186  ;;  %v392_v16 = vpop.permute.xlu1 %391 }
 0x170   :  { %2006 = vmatprep.subr.msk.mxu1 %vm188_vm1, %v187_v15 }
 0x171   :  { %2007 = vmatpush3.xpose.msk.msra.mxu1 %vm188_vm1, %v187_v15 }
 0x173   :  { %v185_v17 = vpop.permute.xlu0 %184  ;;  %v390_v19 = vpop.permute.xlu1 %389 }
 0x174   :  { %2008 = vmatprep.subr.msk.mxu1 %vm188_vm1, %v185_v17 }
 0x175   :  { %2009 = vmatpush3.xpose.msk.msra.mxu1 %vm188_vm1, %v185_v17  ;;  %v601_v17 = vld [vmem:[%s2780_s4 + $0x10] sm:$0xff] }
 0x176   :  { %2020 = vmatprep.subr.msk.mxu1 %vm188_vm1, %v392_v16 }
 0x177   :  { %v386_v18 = vpop.permute.xlu0 %385  ;;  %v388_v20 = vpop.permute.xlu1 %387 }
 0x178   :  { %2011 = vmatmul.mubr.msk.f32.vlgmr.msra.gmra.mxu1 %vm188_vm1, %v2434_v12 }
 0x179   :  { %2021 = vmatpush3.xpose.msk.msra.mxu1 %vm188_vm1, %v392_v16  ;;  %2024 = vmatprep.mubr.msk.f32.mxu1 %vm188_vm1, %v386_v18  ;;  %v602_v16 = vld [vmem:[%s2780_s4 + $0x18] sm:$0xff]  ;;  %v600_v18 = vld [vmem:[%s2780_s4 + $0x8] sm:$0xff] }
 0x17a   :  { %2022 = vmatprep.subr.msk.mxu1 %vm188_vm1, %v390_v19 }
 0x17d   :  { %2023 = vmatpush3.xpose.msk.msra.mxu1 %vm188_vm1, %v390_v19  ;;  %v599_v19 = vld [vmem:[%s2780_s4] sm:$0xff] }
 0x180   :  { %2025 = vmatmul.mubr.msk.f32.vlgmr.msra.gmra.mxu1 %vm188_vm1, %v388_v20 }
 0x238   :  { %v2012_v21 = vpop.f32.mrf.mxu1 }
 0x239   :  { %v273_v23 = vmul.f32 0.25, %v2012_v21 }
 0x23a   :  { %v263_v24 = vpop.f32.mrf.mxu1 }
 0x23b   :  { %v272_v26 = vmul.f32 0.25, %v263_v24  ;;  %v275_v27 = vadd.f32 %v273_v23, %v2464_v22 }
 0x23d   :  { %v279_v28 = vsel %vm188_vm1, %v275_v27, -inf  ;;  %v274_v29 = vadd.f32 %v272_v26, %v2466_v25 }
 0x23e   :  { %280 = vmax.xlane.f32.xlu1 %v279_v28 }
 0x23f   :  { %v276_v30 = vsel %vm188_vm1, %v274_v29, -inf }
 0x240   :  { %v2026_v31 = vpop.f32.mrf.mxu1  ;;  %277 = vmax.xlane.f32.xlu0 %v276_v30  ;;  %v605_v30 = vsub.s32 1, %v2426_v7 }
 0x241   :  { %v477_v33 = vmul.f32 0.25, %v2026_v31 }
 0x242   :  { %v467_v32 = vpop.f32.mrf.mxu1  ;;  %v606_v31 = vrot.slane %v2429_v9, %v605_v30 }
 0x243   :  { %v476_v34 = vmul.f32 0.25, %v467_v32  ;;  %v479_v37 = vadd.f32 %v477_v33, %v2464_v22 }
 0x245   :  { %v478_v35 = vadd.f32 %v476_v34, %v2466_v25  ;;  %v483_v38 = vsel %vm188_vm1, %v479_v37, -inf }
 0x247   :  { %v480_v36 = vsel %vm188_vm1, %v478_v35, -inf }
 0x248   :  { %481 = vmax.xlane.f32.xlu0 %v480_v36 }
 0x24c   :  { %484 = vmax.xlane.f32.xlu0 %v483_v38 }
 0x24f   :  { %300 = vrot.lane.b32.xlu1 %v2434_v12, %s2333_s14 }
 0x2c7   :  { %v281_v39 = vpop.xlane.xlu1 %280 }
 0x2c8   :  { %v283_v40 = vsub.f32 %v275_v27, %v281_v39 }
 0x2c9   :  { %v278_v41 = vpop.xlane.xlu0 %277 }
 0x2ca   :  { %v286_v42 = vmul.f32 1.442695, %v283_v40  ;;  %v282_v43 = vsub.f32 %v274_v29, %v278_v41 }
 0x2cb   :  { %v301_v44 = vpop.permute.xlu1 %300 }
 0x2cc   :  { %2168 = vpow2.f32 %v286_v42  ;;  %v284_v45 = vmul.f32 1.442695, %v282_v43  ;;  %2013 = vmatprep.subr.mxu0 %v301_v44 }
 0x2cd   :  { %2014 = vmatpush3.msra.mxu0 %v301_v44 }
 0x2ce   :  { %2170 = vpow2.f32 %v284_v45 }
 0x2d1   :  { %v482_v46 = vpop.xlane.xlu0 %481 }
 0x2d2   :  { %v486_v56 = vsub.f32 %v478_v35, %v482_v46 }
 0x2d4   :  { %v488_v57 = vmul.f32 1.442695, %v486_v56 }
 0x2d5   :  { %v485_v47 = vpop.xlane.xlu0 %484 }
 0x2d6   :  { %v487_v48 = vsub.f32 %v479_v37, %v485_v47 }
 0x2d8   :  { %v490_v49 = vmul.f32 1.442695, %v487_v48 }
 0x2d9   :  { %v2169_v50 = vpop.eup %2168 }
 0x2da   :  { %2172 = vpow2.f32 %v490_v49  ;;  %v291_v51 = vsel %vm188_vm1, %v2169_v50, 0.0  ;;  %v733_v49 = vld [vmem:[%s2781_s5 + $0x10] sm:$0xff] }
 0x2db   :  { %v2171_v52 = vpop.eup %2170  ;;  %292 = vadd.xlane.f32.xlu0 %v291_v51  ;;  %2174 = vpow2.f32 %v488_v57  ;;  %v731_v51 = vld [vmem:[%s2781_s5] sm:$0xff] }
 0x2dc   :  { %v288_v53 = vsel %vm188_vm1, %v2171_v52, 0.0 }
 0x2dd   :  { %289 = vadd.xlane.f32.xlu1 %v288_v53  ;;  %v828_v53 = vld [vmem:[%s2782_s6 + $0x30] sm:$0xff] }
 0x2e7   :  { %v2173_v54 = vpop.eup %2172 }
 0x2e8   :  { %v495_v55 = vsel %vm188_vm1, %v2173_v54, 0.0  ;;  %v2175_v58 = vpop.eup %2174 }
 0x2e9   :  { %496 = vadd.xlane.f32.xlu0 %v495_v55  ;;  %v492_v59 = vsel %vm188_vm1, %v2175_v58, 0.0  ;;  %v826_v55 = vld [vmem:[%s2782_s6 + $0x20] sm:$0xff] }
 0x2ee   :  { %504 = vrot.lane.b32.xlu1 %v2434_v12, %s2334_s15 }
 0x2ff   :  { %298 = vrot.lane.b32.xlu0 %v2436_v14, %s2333_s14 }
 0x312   :  { %493 = vadd.xlane.f32.xlu1 %v492_v59 }
 0x323   :  { %502 = vrot.lane.b32.xlu1 %v2436_v14, %s2334_s15 }
 0x364   :  { %v293_v60 = vpop.xlane.xlu0 %292 }
 0x365   :  { %2176 = vrcp.f32 %v293_v60 }
 0x366   :  { %v290_v61 = vpop.xlane.xlu1 %289 }
 0x367   :  { %2178 = vrcp.f32 %v290_v61 }
 0x36a   :  { %v505_v6 = vpop.permute.xlu1 %504 }
 0x372   :  { %v497_v62 = vpop.xlane.xlu0 %496  ;;  %v2177_v63 = vpop.eup %2176 }
 0x373   :  { %v297_v4 = vmul.f32 %v2177_v63, %v2169_v50  ;;  %2180 = vrcp.f32 %v497_v62  ;;  %v732_v50 = vld [vmem:[%s2781_s5 + $0x8] sm:$0xff]  ;;  %v719_v62 = vsub.s32 2, %v2426_v7  ;;  %v725_v63 = vsub.s32 3, %v2426_v7 }
 0x374   :  { %v2179_v0 = vpop.eup %2178 }
 0x375   :  { %v295_v1 = vmul.f32 %v2179_v0, %v2171_v52  ;;  %v829_v52 = vld [vmem:[%s2782_s6 + $0x38] sm:$0xff]  ;;  %v720_v0 = vrot.slane %v2429_v9, %v719_v62 }
 0x376   :  { %v299_v3 = vpop.permute.xlu0 %298 }
 0x377   :  { %2015 = vmatprep.subr.mxu0 %v299_v3  ;;  %2017 = vmatprep.mubr.msk.f32.mxu0 %vm188_vm1, %v295_v1 }
 0x378   :  { %2016 = vmatpush3.msra.mxu0 %v299_v3 }
 0x379   :  { %2018 = vmatmul.mubr.msk.f32.vlgmr.msra.gmra.mxu0 %vm188_vm1, %v297_v4  ;;  %2027 = vmatprep.subr.mxu0 %v505_v6  ;;  %v726_v4 = vrot.slane %v2429_v9, %v725_v63 }
 0x37a   :  { %2028 = vmatpush3.msra.mxu0 %v505_v6 }
 0x380   :  { %v2181_v12 = vpop.eup %2180 }
 0x381   :  { %v501_v15 = vmul.f32 %v2181_v12, %v2173_v54  ;;  %v827_v54 = vld [vmem:[%s2782_s6 + $0x28] sm:$0xff] }
 0x39b   :  { %v494_v10 = vpop.xlane.xlu1 %493 }
 0x39c   :  { %2182 = vrcp.f32 %v494_v10 }
 0x39f   :  { %v503_v11 = vpop.permute.xlu1 %502 }
 0x3a0   :  { %2029 = vmatprep.subr.mxu0 %v503_v11 }
 0x3a1   :  { %2030 = vmatpush3.msra.mxu0 %v503_v11  ;;  %v2552_v11 = vld [vmem:[#allocation7] sm:$0xff] }
 0x3a2   :  { %2034 = vmatprep.subr.mxu0 %v602_v16 }
 0x3a9   :  { %v2183_v13 = vpop.eup %2182 }
 0x3aa   :  { %v499_v14 = vmul.f32 %v2183_v13, %v2175_v58 }
 0x3ac   :  { %2031 = vmatprep.mubr.msk.f32.mxu0 %vm188_vm1, %v499_v14 }
 0x3ad   :  { %2032 = vmatmul.mubr.msk.f32.vlgmr.msra.gmra.mxu0 %vm188_vm1, %v501_v15 }
 0x3ae   :  { %2035 = vmatpush3.msra.mxu0 %v602_v16  ;;  %v2555_v16 = vld [vmem:[#allocation7 + $0x8] sm:$0xff] }
 0x3af   :  { %2036 = vmatprep.subr.mxu0 %v601_v17 }
 0x3b0   :  { %2037 = vmatpush3.msra.mxu0 %v601_v17 }
 0x3b1   :  { %2038 = vmatprep.subr.mxu0 %v600_v18 }
 0x3b2   :  { %2039 = vmatpush3.msra.mxu0 %v600_v18 }
 0x3b3   :  { %2040 = vmatprep.subr.mxu0 %v599_v19 }
 0x3b4   :  { %2041 = vmatpush3.msra.mxu0 %v599_v19  ;;  %v825_v19 = vld [vmem:[%s2782_s6 + $0x18] sm:$0xff] }
 0x3b5   :  { %2056 = vmatprep.subr.mxu0 %v829_v52 }
 0x439   :  { %v2019_v20 = vpop.f32.mrf.mxu0 }
 0x43b   :  { %v376_v21 = vpop.f32.mrf.mxu0 }
 0x46d   :  { %v2033_v23 = vpop.f32.mrf.mxu0 }
 0x46e   :  { %593 = vrot.lane.b32.xlu1 %v2033_v23, %s2335_s0  ;;  %v822_v23 = vld [vmem:[%s2782_s6] sm:$0xff] }
 0x46f   :  { %v580_v24 = vpop.f32.mrf.mxu0 }
 0x470   :  { %591 = vrot.lane.b32.xlu0 %v580_v24, %s2335_s0  ;;  %v737_v24 = vsub.s32 4, %v2426_v7 }
 0x4e0   :  { %v594_v26 = vpop.permute.xlu1 %593 }
 0x4e1   :  { %v598_v29 = vsel %vm188_vm1, %v2019_v20, %v594_v26  ;;  %v824_v20 = vld [vmem:[%s2782_s6 + $0x10] sm:$0xff]  ;;  %v738_v26 = vrot.slane %v2429_v9, %v737_v24 }
 0x4e2   :  { %v592_v27 = vpop.permute.xlu0 %591 }
 0x4e3   :  { %v597_v28 = vsel %vm188_vm1, %v376_v21, %v592_v27  ;;  %v823_v21 = vld [vmem:[%s2782_s6 + $0x8] sm:$0xff] }
 0x4e4   :  { %2042 = vmatprep.mubr.msk.f32.mxu0 %vm100_vm0, %v597_v28 }
 0x4e5   :  { %2043 = vmatmul.mubr.msk.f32.vlgmr.msra.gmra.mxu0 %vm100_vm0, %v598_v29 }
 0x4e6   :  { %2057 = vmatpush3.msra.mxu0 %v829_v52  ;;  %v1870_v52 = vld [vmem:[%s2779_s3 + $0x38] sm:$0xff] }
 0x4e7   :  { %2058 = vmatprep.subr.mxu0 %v828_v53 }
 0x4e8   :  { %2059 = vmatpush3.msra.mxu0 %v828_v53  ;;  %v1869_v53 = vld [vmem:[%s2779_s3 + $0x30] sm:$0xff] }
 0x4e9   :  { %2060 = vmatprep.subr.mxu0 %v827_v54 }
 0x4ea   :  { %2061 = vmatpush3.msra.mxu0 %v827_v54  ;;  %v1868_v54 = vld [vmem:[%s2779_s3 + $0x28] sm:$0xff] }
 0x4eb   :  { %2062 = vmatprep.subr.mxu0 %v826_v55 }
 0x4ec   :  { %2063 = vmatpush3.msra.mxu0 %v826_v55  ;;  %v1867_v55 = vld [vmem:[%s2779_s3 + $0x20] sm:$0xff] }
 0x4ed   :  { %2064 = vmatprep.subr.mxu0 %v825_v19 }
 0x4ee   :  { %2065 = vmatpush3.msra.mxu0 %v825_v19 }
 0x4ef   :  { %2066 = vmatprep.subr.mxu0 %v824_v20 }
 0x4f0   :  { %2067 = vmatpush3.msra.mxu0 %v824_v20 }
 0x4f1   :  { %2068 = vmatprep.subr.mxu0 %v823_v21 }
 0x4f2   :  { %2069 = vmatpush3.msra.mxu0 %v823_v21  ;;  %v2616_v21 = vld [vmem:[#allocation8 + $0x8] sm:$0xff] }
 0x4f3   :  { %2070 = vmatprep.subr.mxu0 %v822_v23 }
 0x4f4   :  { %2071 = vmatpush3.msra.mxu0 %v822_v23 }
 0x5a5   :  { %v2044_v32 = vpop.f32.mrf.mxu0 }
 0x5a6   :  { %v685_v33 = vadd.f32 %v2044_v32, %v606_v31 }
 0x5a7   :  { %v679_v34 = vpop.f32.mrf.mxu0 }
 0x5a8   :  { %v680_v35 = vadd.f32 %v679_v34, %v606_v31  ;;  %v689_v36 = vadd.f32 %v685_v33, %v2422_v5  ;;  %v832_v34 = vsub.s32 5, %v2426_v7 }
 0x5aa   :  { %v693_v37 = vsel %vm100_vm0, %v689_v36, 0.0  ;;  %v688_v38 = vadd.f32 %v680_v35, %v2412_v2  ;;  %v734_v2 = vld [vmem:[%s2781_s5 + $0x18] sm:$0xff]  ;;  %v833_v35 = vrot.slane %v2429_v9, %v832_v34 }
 0x5ab   :  { %694 = vadd.xlane.f32.xlu1 %v693_v37  ;;  %2045 = vmatprep.subr.mxu1 %v734_v2 }
 0x5ac   :  { %v690_v39 = vsel %vm100_vm0, %v688_v38, 0.0  ;;  %2046 = vmatpush3.msra.mxu1 %v734_v2 }
 0x5ad   :  { %691 = vadd.xlane.f32.xlu0 %v690_v39  ;;  %2047 = vmatprep.subr.mxu1 %v733_v49 }
 0x5ae   :  { %2048 = vmatpush3.msra.mxu1 %v733_v49 }
 0x5af   :  { %2049 = vmatprep.subr.mxu1 %v732_v50 }
 0x5b0   :  { %2050 = vmatpush3.msra.mxu1 %v732_v50 }
 0x5b1   :  { %2051 = vmatprep.subr.mxu1 %v731_v51 }
 0x5b2   :  { %2052 = vmatpush3.msra.mxu1 %v731_v51 }
 0x5b3   :  { %2075 = vmatprep.subr.mxu1 %v1870_v52 }
 0x634   :  { %v695_v40 = vpop.xlane.xlu1 %694 }
 0x635   :  { %v698_v41 = vmul.f32 0.03125, %v695_v40 }
 0x636   :  { %v692_v42 = vpop.xlane.xlu0 %691 }
 0x637   :  { %v697_v43 = vmul.f32 0.03125, %v692_v42  ;;  %v700_v44 = vsub.f32 %v689_v36, %v698_v41 }
 0x639   :  { %v699_v45 = vsub.f32 %v688_v38, %v697_v43  ;;  %v702_v48 = vmul.f32 %v700_v44, %v700_v44 }
 0x63b   :  { %v701_v46 = vmul.f32 %v699_v45, %v699_v45  ;;  %v706_v5 = vsel %vm100_vm0, %v702_v48, 0.0 }
 0x63d   :  { %v703_v47 = vsel %vm100_vm0, %v701_v46, 0.0 }
 0x63e   :  { %704 = vadd.xlane.f32.xlu0 %v703_v47 }
 0x642   :  { %707 = vadd.xlane.f32.xlu0 %v706_v5 }
 0x6c7   :  { %v705_v56 = vpop.xlane.xlu0 %704 }
 0x6c8   :  { %v709_v57 = vmul.f32 0.03125, %v705_v56 }
 0x6ca   :  { %v711_v58 = vadd.f32 1e-05, %v709_v57 }
 0x6cb   :  { %v708_v59 = vpop.xlane.xlu0 %707 }
 0x6cc   :  { %2184 = vrsqrt.f32 %v711_v58  ;;  %v710_v60 = vmul.f32 0.03125, %v708_v59 }
 0x6ce   :  { %v712_v61 = vadd.f32 1e-05, %v710_v60 }
 0x6d0   :  { %2186 = vrsqrt.f32 %v712_v61 }
 0x6d9   :  { %v2185_v1 = vpop.eup %2184 }
 0x6da   :  { %v715_v3 = vmul.f32 %v2185_v1, %v699_v45  ;;  %v952_v1 = vsub.s32 7, %v2426_v7 }
 0x6dc   :  { %v721_v6 = vmul.f32 %v720_v0, %v715_v3 }
 0x6dd   :  { %v2187_v10 = vpop.eup %2186 }
 0x6de   :  { %v716_v12 = vmul.f32 %v2187_v10, %v700_v44  ;;  %v727_v13 = vadd.f32 %v726_v4, %v721_v6 }
 0x6e0   :  { %v722_v14 = vmul.f32 %v720_v0, %v716_v12  ;;  %v729_v15 = vmul.f32 %v727_v13, %v2552_v11  ;;  %v946_v0 = vsub.s32 6, %v2426_v7  ;;  %v953_v12 = vrot.slane %v2429_v9, %v952_v1 }
 0x6e2   :  { %v728_v17 = vadd.f32 %v726_v4, %v722_v14  ;;  %2053 = vmatprep.mubr.msk.f32.mxu1 %vm100_vm0, %v729_v15  ;;  %v947_v3 = vrot.slane %v2429_v9, %v946_v0  ;;  %v968_v9 = vrot.slane %v2616_v21, %v98_v8 }
 0x6e4   :  { %v730_v18 = vmul.f32 %v728_v17, %v2555_v16 }
 0x6e6   :  { %2054 = vmatmul.mubr.msk.f32.vlgmr.msra.gmra.mxu1 %vm100_vm0, %v730_v18 }
 0x6e7   :  { %2076 = vmatpush3.msra.mxu1 %v1870_v52 }
 0x6e8   :  { %2077 = vmatprep.subr.mxu1 %v1869_v53 }
 0x6e9   :  { %2078 = vmatpush3.msra.mxu1 %v1869_v53 }
 0x6ea   :  { %2079 = vmatprep.subr.mxu1 %v1868_v54 }
 0x6eb   :  { %2080 = vmatpush3.msra.mxu1 %v1868_v54 }
 0x6ec   :  { %2081 = vmatprep.subr.mxu1 %v1867_v55 }
 0x6ed   :  { %2082 = vmatpush3.msra.mxu1 %v1867_v55 }
 0x7a6   :  { %v2055_v27 = vpop.f32.mrf.mxu1 }
 0x7a7   :  { %v817_v28 = vadd.f32 %v2055_v27, %v738_v26 }
 0x7a8   :  { %v811_v29 = vpop.f32.mrf.mxu1 }
 0x7a9   :  { %v812_v31 = vadd.f32 %v811_v29, %v738_v26  ;;  %v821_v33 = vmax.f32 %v817_v28, 0.0 }
 0x7ab   :  { %v820_v32 = vmax.f32 %v812_v31, 0.0 }
 0x7ad   :  { %2072 = vmatprep.mubr.msk.f32.mxu0 %vm834_vm2, %v820_v32 }
 0x7ae   :  { %2073 = vmatmul.mubr.msk.f32.vlgmr.msra.gmra.mxu0 %vm834_vm2, %v821_v33 }
 0x86e   :  { %v2074_v36 = vpop.f32.mrf.mxu0 }
 0x86f   :  { %v913_v37 = vadd.f32 %v2074_v36, %v833_v35 }
 0x870   :  { %v907_v38 = vpop.f32.mrf.mxu0 }
 0x871   :  { %v908_v39 = vadd.f32 %v907_v38, %v833_v35  ;;  %v917_v40 = vadd.f32 %v913_v37, %v730_v18 }
 0x873   :  { %v921_v41 = vsel %vm100_vm0, %v917_v40, 0.0  ;;  %v916_v42 = vadd.f32 %v908_v39, %v729_v15 }
 0x874   :  { %922 = vadd.xlane.f32.xlu0 %v921_v41 }
 0x875   :  { %v918_v43 = vsel %vm100_vm0, %v916_v42, 0.0 }
 0x876   :  { %919 = vadd.xlane.f32.xlu1 %v918_v43 }
 0x8fd   :  { %v923_v44 = vpop.xlane.xlu0 %922 }
 0x8fe   :  { %v925_v45 = vmul.f32 0.03125, %v923_v44 }
 0x8ff   :  { %v920_v46 = vpop.xlane.xlu1 %919 }
 0x900   :  { %v927_v47 = vsub.f32 %v917_v40, %v925_v45  ;;  %v924_v48 = vmul.f32 0.03125, %v920_v46 }
 0x902   :  { %v926_v5 = vsub.f32 %v916_v42, %v924_v48  ;;  %v929_v2 = vmul.f32 %v927_v47, %v927_v47 }
 0x904   :  { %v933_v49 = vsel %vm100_vm0, %v929_v2, 0.0  ;;  %v928_v50 = vmul.f32 %v926_v5, %v926_v5 }
 0x905   :  { %934 = vadd.xlane.f32.xlu0 %v933_v49 }
 0x906   :  { %v930_v51 = vsel %vm100_vm0, %v928_v50, 0.0 }
 0x907   :  { %931 = vadd.xlane.f32.xlu1 %v930_v51 }
 0x98e   :  { %v935_v56 = vpop.xlane.xlu0 %934 }
 0x98f   :  { %v937_v57 = vmul.f32 0.03125, %v935_v56 }
 0x990   :  { %v932_v58 = vpop.xlane.xlu1 %931 }
 0x991   :  { %v939_v59 = vadd.f32 1e-05, %v937_v57  ;;  %v936_v60 = vmul.f32 0.03125, %v932_v58 }
 0x993   :  { %2188 = vrsqrt.f32 %v939_v59  ;;  %v938_v61 = vadd.f32 1e-05, %v936_v60 }
 0x995   :  { %2190 = vrsqrt.f32 %v938_v61 }
 0x9a0   :  { %v2189_v4 = vpop.eup %2188 }
 0x9a1   :  { %v943_v6 = vmul.f32 %v2189_v4, %v927_v47 }
 0x9a2   :  { %v2191_v10 = vpop.eup %2190 }
 0x9a3   :  { %v942_v13 = vmul.f32 %v2191_v10, %v926_v5  ;;  %v949_v14 = vmul.f32 %v947_v3, %v943_v6 }
 0x9a5   :  { %v948_v15 = vmul.f32 %v947_v3, %v942_v13  ;;  %v955_v17 = vadd.f32 %v953_v12, %v949_v14 }
 0x9a7   :  { %v954_v18 = vadd.f32 %v953_v12, %v948_v15  ;;  %v2610_v20 = vmul.f32 %v955_v17, %v2555_v16 }
 0x9a9   :  { %v2607_v19 = vmul.f32 %v954_v18, %v2552_v11 }
 0x9ab   :  { %2083 = vmatprep.mubr.msk.f32.mxu1 %vm100_vm0, %v2607_v19 }
 0x9ac   :  { %2084 = vmatmul.mubr.msk.f32.vlgmr.msra.gmra.mxu1 %vm100_vm0, %v2610_v20 }
 0xa6c   :  { %v2085_v23 = vpop.f32.mrf.mxu1 }
 0xa6d   :  { %v2621_v26 = vadd.f32 %v2085_v23, %v968_v9 }
 0xa6e   :  { %v1041_v27 = vpop.f32.mrf.mxu1 }
 0xa6f   :  { %v2623_v28 = vadd.f32 %v1041_v27, %v968_v9  ;;  %1054 = vrot.lane.b32.xlu1 %v2621_v26, %s2331_s12 }
 0xa71   :  { %1052 = vrot.lane.b32.xlu0 %v2623_v28, %s2331_s12  ;;  %2090 = vmatprep.mubr.msk.f32.mxu1 %vm188_vm1, %v2623_v28 }
 0xa73   :  { %1258 = vrot.lane.b32.xlu1 %v2621_v26, %s2330_s9 }
 0xa75   :  { %1252 = vrot.lane.b32.xlu0 %v2623_v28, %s2332_s13 }
 0xa77   :  { %1256 = vrot.lane.b32.xlu1 %v2623_v28, %s2330_s9 }
 0xa7b   :  { %1254 = vrot.lane.b32.xlu1 %v2621_v26, %s2332_s13 }
 0xae1   :  { %v1055_v8 = vpop.permute.xlu1 %1054 }
 0xae2   :  { %2086 = vmatprep.subr.msk.mxu1 %vm188_vm1, %v1055_v8 }
 0xae3   :  { %2087 = vmatpush3.xpose.msk.msra.mxu1 %vm188_vm1, %v1055_v8  ;;  %v1053_v29 = vpop.permute.xlu0 %1052 }
 0xae4   :  { %2088 = vmatprep.subr.msk.mxu1 %vm188_vm1, %v1053_v29 }
 0xae5   :  { %v1259_v31 = vpop.permute.xlu1 %1258 }
 0xae7   :  { %2089 = vmatpush3.xpose.msk.msra.mxu1 %vm188_vm1, %v1053_v29  ;;  %v1253_v32 = vpop.permute.xlu0 %1252 }
 0xae8   :  { %2100 = vmatprep.subr.msk.mxu1 %vm188_vm1, %v1259_v31 }
 0xae9   :  { %v1257_v33 = vpop.permute.xlu1 %1256 }
 0xaea   :  { %2091 = vmatmul.mubr.msk.f32.vlgmr.msra.gmra.mxu1 %vm188_vm1, %v2621_v26 }
 0xaeb   :  { %2101 = vmatpush3.xpose.msk.msra.mxu1 %vm188_vm1, %v1259_v31  ;;  %2104 = vmatprep.mubr.msk.f32.mxu1 %vm188_vm1, %v1253_v32 }
 0xaec   :  { %2102 = vmatprep.subr.msk.mxu1 %vm188_vm1, %v1257_v33 }
 0xaed   :  { %v1255_v35 = vpop.permute.xlu1 %1254 }
 0xaef   :  { %2103 = vmatpush3.xpose.msk.msra.mxu1 %vm188_vm1, %v1257_v33 }
 0xaf2   :  { %2105 = vmatmul.mubr.msk.f32.vlgmr.msra.gmra.mxu1 %vm188_vm1, %v1255_v35 }
 0xbaa   :  { %v2092_v36 = vpop.f32.mrf.mxu1 }
 0xbab   :  { %v1140_v37 = vmul.f32 0.25, %v2092_v36 }
 0xbac   :  { %v1130_v38 = vpop.f32.mrf.mxu1 }
 0xbad   :  { %v1139_v39 = vmul.f32 0.25, %v1130_v38  ;;  %v1142_v40 = vadd.f32 %v1140_v37, %v2464_v22  ;;  %v1888_v37 = vld [vmem:[%s2780_s4 + $0x38] sm:$0xff]  ;;  %v1887_v38 = vld [vmem:[%s2780_s4 + $0x30] sm:$0xff] }
 0xbaf   :  { %v1146_v41 = vsel %vm188_vm1, %v1142_v40, -inf  ;;  %v1141_v42 = vadd.f32 %v1139_v39, %v2466_v25  ;;  %v1886_v39 = vld [vmem:[%s2780_s4 + $0x28] sm:$0xff] }
 0xbb0   :  { %1147 = vmax.xlane.f32.xlu1 %v1146_v41 }
 0xbb1   :  { %v1143_v43 = vsel %vm188_vm1, %v1141_v42, -inf }
 0xbb2   :  { %v2106_v44 = vpop.f32.mrf.mxu1  ;;  %1144 = vmax.xlane.f32.xlu0 %v1143_v43 }
 0xbb3   :  { %v1344_v46 = vmul.f32 0.25, %v2106_v44 }
 0xbb4   :  { %v1334_v45 = vpop.f32.mrf.mxu1 }
 0xbb5   :  { %v1343_v47 = vmul.f32 0.25, %v1334_v45  ;;  %v1346_v2 = vadd.f32 %v1344_v46, %v2464_v22 }
 0xbb7   :  { %v1345_v48 = vadd.f32 %v1343_v47, %v2466_v25  ;;  %v1350_v49 = vsel %vm188_vm1, %v1346_v2, -inf }
 0xbb9   :  { %v1347_v5 = vsel %vm188_vm1, %v1345_v48, -inf }
 0xbba   :  { %1348 = vmax.xlane.f32.xlu0 %v1347_v5  ;;  %v1474_v5 = vrot.slane %v2616_v21, %v605_v30 }
 0xbbe   :  { %1351 = vmax.xlane.f32.xlu0 %v1350_v49 }
 0xbc1   :  { %1167 = vrot.lane.b32.xlu1 %v2621_v26, %s2333_s14 }
 0xc39   :  { %v1148_v50 = vpop.xlane.xlu1 %1147 }
 0xc3a   :  { %v1150_v51 = vsub.f32 %v1142_v40, %v1148_v50  ;;  %v1885_v40 = vld [vmem:[%s2780_s4 + $0x20] sm:$0xff] }
 0xc3b   :  { %v1145_v52 = vpop.xlane.xlu0 %1144 }
 0xc3c   :  { %v1153_v53 = vmul.f32 1.442695, %v1150_v51  ;;  %v1149_v54 = vsub.f32 %v1141_v42, %v1145_v52 }
 0xc3d   :  { %v1168_v55 = vpop.permute.xlu1 %1167 }
 0xc3e   :  { %2192 = vpow2.f32 %v1153_v53  ;;  %v1151_v56 = vmul.f32 1.442695, %v1149_v54  ;;  %2093 = vmatprep.subr.mxu0 %v1168_v55 }
 0xc3f   :  { %2094 = vmatpush3.msra.mxu0 %v1168_v55 }
 0xc40   :  { %2194 = vpow2.f32 %v1151_v56 }
 0xc43   :  { %v1349_v25 = vpop.xlane.xlu0 %1348 }
 0xc44   :  { %v1353_v10 = vsub.f32 %v1345_v48, %v1349_v25 }
 0xc46   :  { %v1355_v12 = vmul.f32 1.442695, %v1353_v10  ;;  %v1904_v10 = vld [vmem:[%s2782_s6 + $0x78] sm:$0xff] }
 0xc47   :  { %v1352_v22 = vpop.xlane.xlu0 %1351 }
 0xc48   :  { %v1354_v57 = vsub.f32 %v1346_v2, %v1352_v22 }
 0xc4a   :  { %v1357_v58 = vmul.f32 1.442695, %v1354_v57 }
 0xc4b   :  { %v2193_v59 = vpop.eup %2192 }
 0xc4c   :  { %2196 = vpow2.f32 %v1357_v58  ;;  %v1158_v60 = vsel %vm188_vm1, %v2193_v59, 0.0 }
 0xc4d   :  { %v2195_v61 = vpop.eup %2194  ;;  %1159 = vadd.xlane.f32.xlu0 %v1158_v60  ;;  %2198 = vpow2.f32 %v1355_v12  ;;  %v1903_v12 = vld [vmem:[%s2782_s6 + $0x70] sm:$0xff] }
 0xc4e   :  { %v1155_v3 = vsel %vm188_vm1, %v2195_v61, 0.0 }
 0xc4f   :  { %1156 = vadd.xlane.f32.xlu1 %v1155_v3  ;;  %v1893_v3 = vld [vmem:[%s2781_s5 + $0x30] sm:$0xff] }
 0xc59   :  { %v2197_v4 = vpop.eup %2196 }
 0xc5a   :  { %v1362_v6 = vsel %vm188_vm1, %v2197_v4, 0.0  ;;  %v2199_v13 = vpop.eup %2198 }
 0xc5b   :  { %1363 = vadd.xlane.f32.xlu0 %v1362_v6  ;;  %v1359_v14 = vsel %vm188_vm1, %v2199_v13, 0.0  ;;  %v1891_v6 = vld [vmem:[%s2781_s5 + $0x20] sm:$0xff] }
 0xc60   :  { %1371 = vrot.lane.b32.xlu1 %v2621_v26, %s2334_s15 }
 0xc71   :  { %1165 = vrot.lane.b32.xlu0 %v2623_v28, %s2333_s14 }
 0xc84   :  { %1360 = vadd.xlane.f32.xlu1 %v1359_v14  ;;  %v1901_v14 = vld [vmem:[%s2782_s6 + $0x60] sm:$0xff] }
 0xc95   :  { %1369 = vrot.lane.b32.xlu1 %v2623_v28, %s2334_s15 }
 0xcd6   :  { %v1160_v15 = vpop.xlane.xlu0 %1159 }
 0xcd7   :  { %2200 = vrcp.f32 %v1160_v15 }
 0xcd8   :  { %v1157_v17 = vpop.xlane.xlu1 %1156 }
 0xcd9   :  { %2202 = vrcp.f32 %v1157_v17 }
 0xcdc   :  { %v1372_v29 = vpop.permute.xlu1 %1371 }
 0xce4   :  { %v1364_v18 = vpop.xlane.xlu0 %1363  ;;  %v2201_v9 = vpop.eup %2200 }
 0xce5   :  { %v1164_v8 = vmul.f32 %v2201_v9, %v2193_v59  ;;  %2204 = vrcp.f32 %v1364_v18 }
 0xce6   :  { %v2203_v23 = vpop.eup %2202 }
 0xce7   :  { %v1162_v26 = vmul.f32 %v2203_v23, %v2195_v61 }
 0xce8   :  { %v1166_v27 = vpop.permute.xlu0 %1165 }
 0xce9   :  { %2095 = vmatprep.subr.mxu0 %v1166_v27  ;;  %2097 = vmatprep.mubr.msk.f32.mxu0 %vm188_vm1, %v1162_v26 }
 0xcea   :  { %2096 = vmatpush3.msra.mxu0 %v1166_v27  ;;  %v1587_v27 = vrot.slane %v2616_v21, %v719_v62  ;;  %v1900_v62 = vld [vmem:[%s2782_s6 + $0x58] sm:$0xff] }
 0xceb   :  { %2098 = vmatmul.mubr.msk.f32.vlgmr.msra.gmra.mxu0 %vm188_vm1, %v1164_v8  ;;  %2107 = vmatprep.subr.mxu0 %v1372_v29 }
 0xcec   :  { %2108 = vmatpush3.msra.mxu0 %v1372_v29 }
 0xcf2   :  { %v2205_v32 = vpop.eup %2204 }
 0xcf3   :  { %v1368_v36 = vmul.f32 %v2205_v32, %v2197_v4  ;;  %v1892_v4 = vld [vmem:[%s2781_s5 + $0x28] sm:$0xff] }
 0xd0d   :  { %v1361_v28 = vpop.xlane.xlu1 %1360 }
 0xd0e   :  { %2206 = vrcp.f32 %v1361_v28  ;;  %v1593_v28 = vrot.slane %v2616_v21, %v725_v63  ;;  %v1899_v63 = vld [vmem:[%s2782_s6 + $0x50] sm:$0xff] }
 0xd11   :  { %v1370_v31 = vpop.permute.xlu1 %1369 }
 0xd12   :  { %2109 = vmatprep.subr.mxu0 %v1370_v31 }
 0xd13   :  { %2110 = vmatpush3.msra.mxu0 %v1370_v31 }
 0xd14   :  { %2114 = vmatprep.subr.mxu0 %v1888_v37 }
 0xd1b   :  { %v2207_v33 = vpop.eup %2206 }
 0xd1c   :  { %v1366_v35 = vmul.f32 %v2207_v33, %v2199_v13  ;;  %v1902_v13 = vld [vmem:[%s2782_s6 + $0x68] sm:$0xff] }
 0xd1e   :  { %2111 = vmatprep.mubr.msk.f32.mxu0 %vm188_vm1, %v1366_v35 }
 0xd1f   :  { %2112 = vmatmul.mubr.msk.f32.vlgmr.msra.gmra.mxu0 %vm188_vm1, %v1368_v36 }
 0xd20   :  { %2115 = vmatpush3.msra.mxu0 %v1888_v37 }
 0xd21   :  { %2116 = vmatprep.subr.mxu0 %v1887_v38 }
 0xd22   :  { %2117 = vmatpush3.msra.mxu0 %v1887_v38 }
 0xd23   :  { %2118 = vmatprep.subr.mxu0 %v1886_v39 }
 0xd24   :  { %2119 = vmatpush3.msra.mxu0 %v1886_v39 }
 0xd25   :  { %2120 = vmatprep.subr.mxu0 %v1885_v40 }
 0xd26   :  { %2121 = vmatpush3.msra.mxu0 %v1885_v40  ;;  %v1898_v40 = vld [vmem:[%s2782_s6 + $0x48] sm:$0xff] }
 0xd27   :  { %2136 = vmatprep.subr.mxu0 %v1904_v10 }
 0xdab   :  { %v2099_v41 = vpop.f32.mrf.mxu0 }
 0xdad   :  { %v1243_v42 = vpop.f32.mrf.mxu0 }
 0xddf   :  { %v2113_v43 = vpop.f32.mrf.mxu0 }
 0xde0   :  { %1460 = vrot.lane.b32.xlu1 %v2113_v43, %s2335_s0 }
 0xde1   :  { %v1447_v44 = vpop.f32.mrf.mxu0 }
 0xde2   :  { %1458 = vrot.lane.b32.xlu0 %v1447_v44, %s2335_s0 }
 0xe52   :  { %v1461_v45 = vpop.permute.xlu1 %1460 }
 0xe53   :  { %v1465_v48 = vsel %vm188_vm1, %v2099_v41, %v1461_v45  ;;  %v1897_v41 = vld [vmem:[%s2782_s6 + $0x40] sm:$0xff]  ;;  %s2336_s6 = smov [#allocation10]  }
 0xe54   :  { %v1459_v46 = vpop.permute.xlu0 %1458  ;;  %s1833_s15 = sshll.u32 %s2336_s6, 4  ;;  %s1834_s15 = int_to_ptr.vmem [resolvable:$true] %s1833_s15 }
 0xe55   :  { %v1464_v47 = vsel %vm188_vm1, %v1243_v42, %v1459_v46  ;;  %v1606_v42 = vrot.slane %v2616_v21, %v737_v24  ;;  %s2296_s20 = scalar_lea.vmem %s1834_s15, 256  ;;  %p2301_p7 = scmp.lt.s32.totalorder %s1834_s15, %s1834_s15 }
 0xe56   :  { %2122 = vmatprep.mubr.msk.f32.mxu0 %vm100_vm0, %v1464_v47  ;;  %p2297_p6 = scmp.ne.s32.totalorder %s1834_s15, %s2296_s20  ;;  %p2302_p8 = scmp.lt.s32.totalorder %s2296_s20, %s2296_s20 }
 0xe57   :  { %2123 = vmatmul.mubr.msk.f32.vlgmr.msra.gmra.mxu0 %vm100_vm0, %v1465_v48 }
 0xe58   :  { %2137 = vmatpush3.msra.mxu0 %v1904_v10  ;;  %v1815_v10 = vrot.slane %v2616_v21, %v946_v0  ;;  %p2303_p9 = por %p2302_p8, %p2301_p7 }
 0xe59   :  { %2138 = vmatprep.subr.mxu0 %v1903_v12 }
 0xe5a   :  { %2139 = vmatpush3.msra.mxu0 %v1903_v12  ;;  %p2304_p10 = pnand %p2303_p9, %p2297_p6 }
 0xe5b   :  { %2140 = vmatprep.subr.mxu0 %v1902_v13 }
 0xe5c   :  { %2141 = vmatpush3.msra.mxu0 %v1902_v13 }
 0xe5d   :  { %2142 = vmatprep.subr.mxu0 %v1901_v14 }
 0xe5e   :  { %2143 = vmatpush3.msra.mxu0 %v1901_v14  ;;  %v1821_v14 = vrot.slane %v2616_v21, %v952_v1 }
 0xe5f   :  { %2144 = vmatprep.subr.mxu0 %v1900_v62 }
 0xe60   :  { %2145 = vmatpush3.msra.mxu0 %v1900_v62 }
 0xe61   :  { %2146 = vmatprep.subr.mxu0 %v1899_v63 }
 0xe62   :  { %2147 = vmatpush3.msra.mxu0 %v1899_v63 }
 0xe63   :  { %2148 = vmatprep.subr.mxu0 %v1898_v40 }
 0xe64   :  { %2149 = vmatpush3.msra.mxu0 %v1898_v40 }
 0xe65   :  { %2150 = vmatprep.subr.mxu0 %v1897_v41 }
 0xe66   :  { %2151 = vmatpush3.msra.mxu0 %v1897_v41 }
 0xf17   :  { %v2124_v2 = vpop.f32.mrf.mxu0 }
 0xf18   :  { %v1553_v49 = vadd.f32 %v2124_v2, %v1474_v5 }
 0xf19   :  { %v1547_v50 = vpop.f32.mrf.mxu0 }
 0xf1a   :  { %v1548_v51 = vadd.f32 %v1547_v50, %v1474_v5  ;;  %v1557_v52 = vadd.f32 %v1553_v49, %v2610_v20  ;;  %v1702_v5 = vrot.slane %v2616_v21, %v832_v34 }
 0xf1c   :  { %v1561_v53 = vsel %vm100_vm0, %v1557_v52, 0.0  ;;  %v1556_v54 = vadd.f32 %v1548_v51, %v2607_v19  ;;  %v1894_v19 = vld [vmem:[%s2781_s5 + $0x38] sm:$0xff] }
 0xf1d   :  { %1562 = vadd.xlane.f32.xlu1 %v1561_v53  ;;  %2125 = vmatprep.subr.mxu1 %v1894_v19 }
 0xf1e   :  { %v1558_v55 = vsel %vm100_vm0, %v1556_v54, 0.0  ;;  %2126 = vmatpush3.msra.mxu1 %v1894_v19 }
 0xf1f   :  { %1559 = vadd.xlane.f32.xlu0 %v1558_v55  ;;  %2127 = vmatprep.subr.mxu1 %v1893_v3 }
 0xf20   :  { %2128 = vmatpush3.msra.mxu1 %v1893_v3 }
 0xf21   :  { %2129 = vmatprep.subr.mxu1 %v1892_v4 }
 0xf22   :  { %2130 = vmatpush3.msra.mxu1 %v1892_v4 }
 0xf23   :  { %2131 = vmatprep.subr.mxu1 %v1891_v6 }
 0xf24   :  { %2132 = vmatpush3.msra.mxu1 %v1891_v6 }
 0xfa6   :  { %v1563_v56 = vpop.xlane.xlu1 %1562 }
 0xfa7   :  { %v1565_v25 = vmul.f32 0.03125, %v1563_v56 }
 0xfa8   :  { %v1560_v22 = vpop.xlane.xlu0 %1559 }
 0xfa9   :  { %v1564_v57 = vmul.f32 0.03125, %v1560_v22  ;;  %v1567_v58 = vsub.f32 %v1557_v52, %v1565_v25 }
 0xfab   :  { %v1566_v30 = vsub.f32 %v1556_v54, %v1564_v57  ;;  %v1569_v61 = vmul.f32 %v1567_v58, %v1567_v58 }
 0xfad   :  { %v1568_v59 = vmul.f32 %v1566_v30, %v1566_v30  ;;  %v1573_v20 = vsel %vm100_vm0, %v1569_v61, 0.0 }
 0xfaf   :  { %v1570_v60 = vsel %vm100_vm0, %v1568_v59, 0.0 }
 0xfb0   :  { %1571 = vadd.xlane.f32.xlu0 %v1570_v60 }
 0xfb4   :  { %1574 = vadd.xlane.f32.xlu0 %v1573_v20 }
0x1039   :  { %v1572_v15 = vpop.xlane.xlu0 %1571 }
0x103a   :  { %v1576_v17 = vmul.f32 0.03125, %v1572_v15 }
0x103c   :  { %v1578_v18 = vadd.f32 1e-05, %v1576_v17 }
0x103d   :  { %v1575_v9 = vpop.xlane.xlu0 %1574 }
0x103e   :  { %2208 = vrsqrt.f32 %v1578_v18  ;;  %v1577_v23 = vmul.f32 0.03125, %v1575_v9 }
0x1040   :  { %v1579_v26 = vadd.f32 1e-05, %v1577_v23 }
0x1042   :  { %2210 = vrsqrt.f32 %v1579_v26 }
0x104b   :  { %v2209_v8 = vpop.eup %2208 }
0x104c   :  { %v1582_v29 = vmul.f32 %v2209_v8, %v1566_v30 }
0x104e   :  { %v1588_v31 = vmul.f32 %v1587_v27, %v1582_v29 }
0x104f   :  { %v2211_v32 = vpop.eup %2210 }
0x1050   :  { %v1583_v33 = vmul.f32 %v2211_v32, %v1567_v58  ;;  %v1594_v35 = vadd.f32 %v1593_v28, %v1588_v31 }
0x1052   :  { %v1589_v36 = vmul.f32 %v1587_v27, %v1583_v33  ;;  %v1596_v37 = vmul.f32 %v1594_v35, %v2552_v11 }
0x1054   :  { %v1595_v38 = vadd.f32 %v1593_v28, %v1589_v36  ;;  %2133 = vmatprep.mubr.msk.f32.mxu1 %vm100_vm0, %v1596_v37 }
0x1056   :  { %v1597_v39 = vmul.f32 %v1595_v38, %v2555_v16 }
0x1058   :  { %2134 = vmatmul.mubr.msk.f32.vlgmr.msra.gmra.mxu1 %vm100_vm0, %v1597_v39 }
0x1118   :  { %v2135_v43 = vpop.f32.mrf.mxu1 }
0x1119   :  { %v1685_v44 = vadd.f32 %v2135_v43, %v1606_v42 }
0x111a   :  { %v1679_v45 = vpop.f32.mrf.mxu1 }
0x111b   :  { %v1680_v46 = vadd.f32 %v1679_v45, %v1606_v42  ;;  %v1689_v48 = vmax.f32 %v1685_v44, 0.0 }
0x111d   :  { %v1688_v47 = vmax.f32 %v1680_v46, 0.0 }
0x111f   :  { %2152 = vmatprep.mubr.msk.f32.mxu0 %vm834_vm2, %v1688_v47 }
0x1120   :  { %2153 = vmatmul.mubr.msk.f32.vlgmr.msra.gmra.mxu0 %vm834_vm2, %v1689_v48 }
0x11e0   :  { %v2154_v2 = vpop.f32.mrf.mxu0 }
0x11e1   :  { %v1781_v49 = vadd.f32 %v2154_v2, %v1702_v5 }
0x11e2   :  { %v1775_v50 = vpop.f32.mrf.mxu0 }
0x11e3   :  { %v1776_v51 = vadd.f32 %v1775_v50, %v1702_v5  ;;  %v1785_v52 = vadd.f32 %v1781_v49, %v1597_v39 }
0x11e5   :  { %v1789_v24 = vsel %vm100_vm0, %v1785_v52, 0.0  ;;  %v1784_v53 = vadd.f32 %v1776_v51, %v1596_v37 }
0x11e6   :  { %1790 = vadd.xlane.f32.xlu0 %v1789_v24 }
0x11e7   :  { %v1786_v54 = vsel %vm100_vm0, %v1784_v53, 0.0 }
0x11e8   :  { %1787 = vadd.xlane.f32.xlu1 %v1786_v54 }
0x126f   :  { %v1791_v55 = vpop.xlane.xlu0 %1790 }
0x1270   :  { %v1793_v56 = vmul.f32 0.03125, %v1791_v55 }
0x1271   :  { %v1788_v25 = vpop.xlane.xlu1 %1787 }
0x1272   :  { %v1795_v22 = vsub.f32 %v1785_v52, %v1793_v56  ;;  %v1792_v57 = vmul.f32 0.03125, %v1788_v25 }
0x1274   :  { %v1794_v58 = vsub.f32 %v1784_v53, %v1792_v57  ;;  %v1797_v30 = vmul.f32 %v1795_v22, %v1795_v22 }
0x1276   :  { %v1801_v34 = vsel %vm100_vm0, %v1797_v30, 0.0  ;;  %v1796_v59 = vmul.f32 %v1794_v58, %v1794_v58 }
0x1277   :  { %1802 = vadd.xlane.f32.xlu0 %v1801_v34 }
0x1278   :  { %v1798_v60 = vsel %vm100_vm0, %v1796_v59, 0.0 }
0x1279   :  { %1799 = vadd.xlane.f32.xlu1 %v1798_v60 }
0x1300   :  { %v1803_v61 = vpop.xlane.xlu0 %1802 }
0x1301   :  { %v1805_v20 = vmul.f32 0.03125, %v1803_v61 }
0x1302   :  { %v1800_v19 = vpop.xlane.xlu1 %1799 }
0x1303   :  { %v1807_v3 = vadd.f32 1e-05, %v1805_v20  ;;  %v1804_v4 = vmul.f32 0.03125, %v1800_v19 }
0x1305   :  { %2212 = vrsqrt.f32 %v1807_v3  ;;  %v1806_v6 = vadd.f32 1e-05, %v1804_v4 }
0x1307   :  { %2214 = vrsqrt.f32 %v1806_v6 }
0x1312   :  { %v2213_v12 = vpop.eup %2212 }
0x1313   :  { %v1811_v13 = vmul.f32 %v2213_v12, %v1795_v22 }
0x1314   :  { %v2215_v15 = vpop.eup %2214 }
0x1315   :  { %v1810_v17 = vmul.f32 %v2215_v15, %v1794_v58  ;;  %v1817_v18 = vmul.f32 %v1815_v10, %v1811_v13 }
0x1317   :  { %v1816_v9 = vmul.f32 %v1815_v10, %v1810_v17  ;;  %v1823_v23 = vadd.f32 %v1821_v14, %v1817_v18 }
0x1319   :  { %v1822_v26 = vadd.f32 %v1821_v14, %v1816_v9  ;;  %v1825_v27 = vmul.f32 %v1823_v23, %v2555_v16 }
0x131b   :  { %v1824_v8 = vmul.f32 %v1822_v26, %v2552_v11  ;;  %1827 = vst.msk [vmem:[#allocation10 + $0x8] sm:$0xff] %vm100_vm0, %v1825_v27 }
0x131d   :  { %1826 = vst.msk [vmem:[#allocation10] sm:$0xff] %vm100_vm0, %v1824_v8 }
0x131e   :  { %2307 = shalt.err (!%p2304_p10)
}
0x131f   :  { %1839 = dma.vmem_to_hbm [thread:$0]  %s1834_s15, 256, %s2784_s8, [#allocation4], %s2326_s10, %s2326_s10, %s2327_s11  }
0x1320   :  { %2322 = dma.done.wait [#allocation4], 256  }
0x1321   :  { %2323 = vsyncadd [#allocation4], 4294967040 }
0x1322   :  { %1843 = vsyncpa [#allocation3], 1 }
0x1323   :  { %1844 = vsyncpa [#allocation6], 1 }
0x1324   :  { %1845 = vsyncpa [#allocation9], 1 }
0x1325   :  { %1846 = vsyncpa [#allocation4], 1 }

</bundles_post_ra>
